<compile_context>
chip_gen: v6e
topology: v6e:2x2x1
jax: 0.10.0
libtpu: 0.0.40
codegen_flags: <defaults>
</compile_context>

<pallas_src>
import functools
import math

import jax
import jax.numpy as jnp
from jax.experimental import pallas as pl
from jax.experimental.pallas import tpu as pltpu


# ----------------------------------------------------------------------------
# Pallas kernel: grid = (row tiles, K tiles). K is the reduction (innermost).
# ----------------------------------------------------------------------------
def _acmgcn_kernel(att_ref,                      # SMEM (3, 3) mixing matrix
                   adj_ref,                      # (tm, tk) adj_low tile
                   xwcat_ref,                    # (tk, 2*F_out) [xw_low|xw_high]
                   xwh_ref,                      # (tm, F_out) xw_high row tile
                   xwm_ref,                      # (tm, F_out) xw_mlp row tile
                   avl_ref, avh_ref, avm_ref,    # (1, F_out) attention vectors
                   o_ref,                        # (tm, F_out) output tile
                   acc_ref,                      # (tm, 2*F_out) f32 scratch
                   *, f_out, active_filters, out_scale, temperature):
    k = pl.program_id(1)

    @pl.when(k == 0)
    def _():
        acc_ref[...] = jnp.zeros_like(acc_ref)

    # Single MXU matmul per K step: adj_low_tile @ [xw_low | xw_high].
    acc_ref[...] += jnp.dot(adj_ref[...], xwcat_ref[...],
                            preferred_element_type=jnp.float32)

    @pl.when(k == pl.num_programs(1) - 1)
    def _():
        acc = acc_ref[...]
        agg_low = acc[:, :f_out]
        agg_high = acc[:, f_out:]

        h_low = jnp.maximum(agg_low, 0.0)
        # adj_high = I - adj_low  =>  adj_high @ xw_high = xw_high - adj_low @ xw_high
        h_high = jnp.maximum(xwh_ref[...] - agg_high, 0.0)
        h_mlp = jnp.maximum(xwm_ref[...], 0.0)

        # Attention scores: sigmoid(h @ a) via VPU multiply + lane reduce.
        s_low = jax.nn.sigmoid(jnp.sum(h_low * avl_ref[...], axis=-1, keepdims=True))
        s_high = jax.nn.sigmoid(jnp.sum(h_high * avh_ref[...], axis=-1, keepdims=True))
        s_mlp = jax.nn.sigmoid(jnp.sum(h_mlp * avm_ref[...], axis=-1, keepdims=True))

        # logits = sigmoid(scores) @ att_vec / T, unrolled over the 3x3 SMEM table.
        inv_t = 1.0 / temperature
        logits = [
            (s_low * att_ref[0, j] + s_high * att_ref[1, j] + s_mlp * att_ref[2, j])
            * inv_t for j in range(3)
        ]

        # Row-wise softmax over the 3 filter logits; reciprocal on the EUP,
        # out-scale folded into the reciprocal.
        m = jnp.maximum(jnp.maximum(logits[0], logits[1]), logits[2])
        e0 = jnp.exp(logits[0] - m)
        e1 = jnp.exp(logits[1] - m)
        e2 = jnp.exp(logits[2] - m)
        inv_den = pl.reciprocal(e0 + e1 + e2, approx=True) * out_scale

        terms = []
        if active_filters[0]:
            terms.append((e0 * inv_den) * h_low)
        if active_filters[1]:
            terms.append((e1 * inv_den) * h_high)
        if active_filters[2]:
            terms.append((e2 * inv_den) * h_mlp)
        if terms:
            out = terms[0]
            for t in terms[1:]:
                out = out + t
        else:
            out = jnp.zeros_like(h_mlp)

        o_ref[...] = out.astype(o_ref.dtype)


# ----------------------------------------------------------------------------
# Wrapper: hoisted projections, K-tiled grid, bf16 adjacency by default.
# ----------------------------------------------------------------------------
def acmgcn_forward(x, adj_low, w_low, w_high, w_mlp,
                   av_low, av_high, av_mlp, att_vec,
                   *, active_filters=(True, True, True),
                   block_rows=512, block_k=512,
                   compute_dtype=jnp.bfloat16):
    """x: (N,F_in). adj_low: (N,N) dense sym-normalized low-pass adjacency
    (adj_high is assumed to be I - adj_low, the ACM-GCN construction).
    w_*: (F_in,F_out). av_*: (F_out,1). att_vec: (3,3). Returns (N,F_out) f32."""
    n, f_in = x.shape
    f_out = w_low.shape[1]
    cd = jnp.dtype(compute_dtype)

    # ---- projections hoisted out of the kernel (computed once, not per tile) ----
    x32 = x.astype(jnp.float32)
    xw_low = x32 @ w_low.astype(jnp.float32)
    xw_high = x32 @ w_high.astype(jnp.float32)
    xw_mlp = x32 @ w_mlp.astype(jnp.float32)
    xw_cat = jnp.concatenate([xw_low, xw_high], axis=1).astype(cd)  # (N, 2*F_out)

    # ---- tile selection: sublane/lane aligned, VMEM-budget aware ----
    tm = min(block_rows, n)
    if tm < n:
        tm = max(16, (tm // 16) * 16)          # multiple of 16 (bf16 packing)
    tk = min(block_k, n)
    if tk < n:
        tk = max(128, (tk // 128) * 128)       # lane-aligned adjacency columns
        if tk >= n:
            tk = n
    grid_rows = pl.cdiv(n, tm)
    grid_k = pl.cdiv(n, tk)
    n_pad = grid_k * tk

    adj_c = adj_low.astype(cd)
    if n_pad != n:
        # Zero-pad the contraction axis so partial K blocks never pull
        # unspecified data into valid output rows. (Partial ROW tiles are
        # benign: garbage stays confined to masked-out output rows.)
        adj_c = jnp.pad(adj_c, ((0, 0), (0, n_pad - n)))
        xw_cat = jnp.pad(xw_cat, ((0, n_pad - n), (0, 0)))

    avl = av_low.reshape(1, f_out).astype(jnp.float32)
    avh = av_high.reshape(1, f_out).astype(jnp.float32)
    avm = av_mlp.reshape(1, f_out).astype(jnp.float32)

    kernel = functools.partial(
        _acmgcn_kernel,
        f_out=f_out,
        active_filters=tuple(bool(a) for a in active_filters),
        out_scale=3.0,        # the "3 *" factor of the acmgcn branch
        temperature=3.0)      # T = 3 in attention3

    # ---- VMEM budget (double-buffered inputs + scratch + output) ----
    vmem_est = (2 * tm * tk * cd.itemsize            # adjacency tiles
                + 2 * tk * 2 * f_out * cd.itemsize   # xw_cat K blocks
                + 2 * 2 * tm * f_out * 4             # xw_high / xw_mlp row tiles
                + 2 * 3 * f_out * 4                  # attention vectors
                + tm * 2 * f_out * 4                 # accumulator scratch
                + 2 * tm * f_out * 4)                # output tiles
    vmem_limit = int(min(48 * 2**20, max(32 * 2**20, 2 * vmem_est)))

    # ---- cost estimate reflecting in-kernel work only ----
    flops = int(2 * n * n_pad * 2 * f_out + 30 * n * f_out)
    bytes_accessed = int(cd.itemsize * (n * n_pad + grid_rows * n_pad * 2 * f_out)
                         + 4 * (3 * n * f_out + 3 * f_out + 9))
    cost = pl.CostEstimate(flops=flops, transcendentals=int(7 * n),
                           bytes_accessed=bytes_accessed)

    return pl.pallas_call(
        kernel,
        out_shape=jax.ShapeDtypeStruct((n, f_out), jnp.float32),
        grid=(grid_rows, grid_k),
        in_specs=[
            pl.BlockSpec(memory_space=pltpu.MemorySpace.SMEM),        # att_vec (3,3)
            pl.BlockSpec((tm, tk), lambda i, k: (i, k)),              # adj_low tile
            pl.BlockSpec((tk, 2 * f_out), lambda i, k: (k, 0)),       # [xw_low|xw_high]
            pl.BlockSpec((tm, f_out), lambda i, k: (i, 0)),           # xw_high rows
            pl.BlockSpec((tm, f_out), lambda i, k: (i, 0)),           # xw_mlp rows
            pl.BlockSpec((1, f_out), lambda i, k: (0, 0)),            # att_vec_low
            pl.BlockSpec((1, f_out), lambda i, k: (0, 0)),            # att_vec_high
            pl.BlockSpec((1, f_out), lambda i, k: (0, 0)),            # att_vec_mlp
        ],
        out_specs=pl.BlockSpec((tm, f_out), lambda i, k: (i, 0)),
        scratch_shapes=[pltpu.VMEM((tm, 2 * f_out), jnp.float32)],
        compiler_params=pltpu.CompilerParams(
            dimension_semantics=("parallel", "arbitrary"),
            vmem_limit_bytes=vmem_limit),
        cost_estimate=cost,
    )(att_vec.astype(jnp.float32), adj_c, xw_cat,
      xw_high, xw_mlp, avl, avh, avm)


# ----------------------------------------------------------------------------
# Plain-JAX glue: adjacency construction (sym-normalized low-pass + high-pass).
# ----------------------------------------------------------------------------
def build_acm_adjacencies(edge_index, num_nodes):
    src, dst = edge_index[0], edge_index[1]
    A = jnp.zeros((num_nodes, num_nodes), jnp.float32)
    A = A.at[src, dst].add(1.0)
    A = jnp.minimum(A + A.T, 1.0)                                     # undirected
    A = jnp.minimum(A + jnp.eye(num_nodes, dtype=jnp.float32), 1.0)   # self loops
    deg = A.sum(axis=1)
    d_inv_sqrt = jnp.where(deg > 0, 1.0 / jnp.sqrt(deg), 0.0)
    adj_low = d_inv_sqrt[:, None] * A * d_inv_sqrt[None, :]
    adj_high = jnp.eye(num_nodes, dtype=jnp.float32) - adj_low
    return adj_low, adj_high


# ----------------------------------------------------------------------------
# Deterministic parameter init (mirrors ACMGCNConv.reset_parameters).
# ----------------------------------------------------------------------------
def init_acmgcn_params(key, f_in, f_out):
    ks = jax.random.split(key, 7)
    stdv = 1.0 / math.sqrt(f_out)
    w_low = jax.random.uniform(ks[0], (f_in, f_out), jnp.float32, -stdv, stdv)
    w_high = jax.random.uniform(ks[1], (f_in, f_out), jnp.float32, -stdv, stdv)
    w_mlp = jax.random.uniform(ks[2], (f_in, f_out), jnp.float32, -stdv, stdv)
    std_att = 1.0  # 1 / sqrt(att_vec_mlp.size(1)) = 1 / sqrt(1)
    av_low = jax.random.uniform(ks[3], (f_out, 1), jnp.float32, -std_att, std_att)
    av_high = jax.random.uniform(ks[4], (f_out, 1), jnp.float32, -std_att, std_att)
    av_mlp = jax.random.uniform(ks[5], (f_out, 1), jnp.float32, -std_att, std_att)
    std_av = 1.0 / math.sqrt(3.0)
    att_vec = jax.random.uniform(ks[6], (3, 3), jnp.float32, -std_av, std_av)
    return w_low, w_high, w_mlp, av_low, av_high, av_mlp, att_vec


# ----------------------------------------------------------------------------
# Pure-JAX reference (mirrors the PyTorch forward, acmgcn path).
# ----------------------------------------------------------------------------
def acmgcn_reference(x, adj_low, adj_high,
                     w_low, w_high, w_mlp,
                     av_low, av_high, av_mlp, att_vec,
                     active_filters=(True, True, True)):
    h_low = jnp.maximum(adj_low @ (x @ w_low), 0.0)
    h_high = jnp.maximum(adj_high @ (x @ w_high), 0.0)
    h_mlp = jnp.maximum(x @ w_mlp, 0.0)
    feat = jnp.concatenate(
        [h_low @ av_low, h_high @ av_high, h_mlp @ av_mlp], axis=1)
    logits = jax.nn.sigmoid(feat) @ att_vec / 3.0
    att = jax.nn.softmax(logits, axis=1)
    return 3.0 * (att[:, 0:1] * h_low * float(active_filters[0])
                  + att[:, 1:2] * h_high * float(active_filters[1])
                  + att[:, 2:3] * h_mlp * float(active_filters[2]))


if __name__ == "__main__":
    key = jax.random.PRNGKey(0)
    k_x, k_p = jax.random.split(key, 2)

    in_features, out_features = 16, 32

    def run_case(num_nodes, num_edges, compute_dtype, block_rows, block_k, tol):
        kx, ke1, ke2 = jax.random.split(jax.random.fold_in(k_x, num_nodes), 3)
        x = jax.random.normal(kx, (num_nodes, in_features), jnp.float32)
        src = jax.random.randint(ke1, (num_edges,), 0, num_nodes)
        dst = jax.random.randint(ke2, (num_edges,), 0, num_nodes)
        edge_index = jnp.stack([src, dst], axis=0)

        adj_low, adj_high = build_acm_adjacencies(edge_index, num_nodes)
        params = init_acmgcn_params(k_p, in_features, out_features)

        out = acmgcn_forward(x, adj_low, *params,
                             block_rows=block_rows, block_k=block_k,
                             compute_dtype=compute_dtype)
        out = jax.block_until_ready(out)

        ref = acmgcn_reference(x, adj_low, adj_high, *params)
        assert out.shape == (num_nodes, out_features)
        max_err = float(jnp.max(jnp.abs(out - ref)))
        assert jnp.allclose(out, ref, atol=tol, rtol=tol), max_err

    # f32 adjacency, tiles divide N exactly: exercises row + K grid axes.
    run_case(256, 1024, jnp.float32, 64, 128, 5e-3)
    # bf16 adjacency (default dtype), N not divisible by tiles: exercises the
    # zero-padded K axis and the masked partial last row tile.
    run_case(200, 800, jnp.bfloat16, 64, 128, 5e-2)

    print("KERNEL_OK")
</pallas_src>

<mosaic_0001>
module attributes {stable_mosaic.version = 11 : i64} {
  func.func @_acmgcn_kernel(%arg0: i32, %arg1: i32, %arg2: memref<3x3xf32, #tpu.memory_space<smem>>, %arg3: memref<64x128xf32, #tpu.memory_space<vmem>>, %arg4: memref<128x64xf32, #tpu.memory_space<vmem>>, %arg5: memref<64x32xf32, #tpu.memory_space<vmem>>, %arg6: memref<64x32xf32, #tpu.memory_space<vmem>>, %arg7: memref<1x32xf32, #tpu.memory_space<vmem>>, %arg8: memref<1x32xf32, #tpu.memory_space<vmem>>, %arg9: memref<1x32xf32, #tpu.memory_space<vmem>>, %arg10: memref<64x32xf32, #tpu.memory_space<vmem>>, %arg11: memref<64x64xf32, #tpu.memory_space<vmem>>) attributes {dimension_semantics = [#tpu.dimension_semantics<parallel>, #tpu.dimension_semantics<arbitrary>], iteration_bounds = array<i64: 4, 2>, scalar_prefetch = 0 : i64, scratch_operands = 1 : i64, tpu.core_type = #tpu.core_type<tc>, window_params = [{transform_indices = @transform_0, window_bounds = array<i64: 3, 3>}, {transform_indices = @transform_1, window_bounds = array<i64: 64, 128>}, {transform_indices = @transform_2, window_bounds = array<i64: 128, 64>}, {transform_indices = @transform_3, window_bounds = array<i64: 64, 32>}, {transform_indices = @transform_4, window_bounds = array<i64: 64, 32>}, {pipeline_mode = #tpu.pipeline_mode<synchronous>, transform_indices = @transform_5, window_bounds = array<i64: 1, 32>}, {pipeline_mode = #tpu.pipeline_mode<synchronous>, transform_indices = @transform_6, window_bounds = array<i64: 1, 32>}, {pipeline_mode = #tpu.pipeline_mode<synchronous>, transform_indices = @transform_7, window_bounds = array<i64: 1, 32>}, {transform_indices = @transform_8, window_bounds = array<i64: 64, 32>}]} {
    %c0_i32 = arith.constant 0 : i32
    %0 = arith.cmpi eq, %arg1, %c0_i32 : i32
    %1 = arith.extui %0 : i1 to i32
    %c0_i32_0 = arith.constant 0 : i32
    %2 = arith.cmpi ne, %1, %c0_i32_0 : i32
    scf.if %2 {
      %cst_9 = arith.constant 0.000000e+00 : f32
      %12 = vector.broadcast %cst_9 : f32 to vector<64x64xf32>
      %c0_10 = arith.constant 0 : index
      %c0_11 = arith.constant 0 : index
      %13 = vector.load %arg11[%c0_10, %c0_11] : memref<64x64xf32, #tpu.memory_space<vmem>>, vector<64x64xf32>
      tpu.vector_store %arg11[%c0_10, %c0_11], %12 {strides = array<i32>} : memref<64x64xf32, #tpu.memory_space<vmem>>, vector<64x64xf32>,
    } else {
    }
    %c0 = arith.constant 0 : index
    %c0_1 = arith.constant 0 : index
    %3 = vector.load %arg11[%c0, %c0_1] : memref<64x64xf32, #tpu.memory_space<vmem>>, vector<64x64xf32>
    %c0_2 = arith.constant 0 : index
    %c0_3 = arith.constant 0 : index
    %4 = vector.load %arg3[%c0_2, %c0_3] : memref<64x128xf32, #tpu.memory_space<vmem>>, vector<64x128xf32>
    %c0_4 = arith.constant 0 : index
    %c0_5 = arith.constant 0 : index
    %5 = vector.load %arg4[%c0_4, %c0_5] : memref<128x64xf32, #tpu.memory_space<vmem>>, vector<128x64xf32>
    %cst = arith.constant dense<0.000000e+00> : vector<64x64xf32>
    %6 = tpu.matmul %4, %5, %cst {dimension_numbers = #tpu.dot_dimension_numbers<[1], [0], [0], [1], [0, 0, 1, 1], [], []>} : vector<64x128xf32>, vector<128x64xf32>, vector<64x64xf32> -> vector<64x64xf32>
    %7 = arith.addf %3, %6 : vector<64x64xf32>
    %c0_6 = arith.constant 0 : index
    %c0_7 = arith.constant 0 : index
    %8 = vector.load %arg11[%c0_6, %c0_7] : memref<64x64xf32, #tpu.memory_space<vmem>>, vector<64x64xf32>
    tpu.vector_store %arg11[%c0_6, %c0_7], %7 {strides = array<i32>} : memref<64x64xf32, #tpu.memory_space<vmem>>, vector<64x64xf32>,
    %c1_i32 = arith.constant 1 : i32
    %9 = arith.cmpi eq, %arg1, %c1_i32 : i32
    %10 = arith.extui %9 : i1 to i32
    %c0_i32_8 = arith.constant 0 : i32
    %11 = arith.cmpi ne, %10, %c0_i32_8 : i32
    scf.if %11 {
      %c0_9 = arith.constant 0 : index
      %c0_10 = arith.constant 0 : index
      %12 = vector.load %arg11[%c0_9, %c0_10] : memref<64x64xf32, #tpu.memory_space<vmem>>, vector<64x64xf32>
      %13 = vector.extract_strided_slice %12 {offsets = [0, 0], sizes = [64, 32], strides = [1, 1]} : vector<64x64xf32> to vector<64x32xf32>
      %14 = vector.extract_strided_slice %12 {offsets = [0, 32], sizes = [64, 32], strides = [1, 1]} : vector<64x64xf32> to vector<64x32xf32>
      %cst_11 = arith.constant 0.000000e+00 : f32
      %15 = vector.broadcast %cst_11 : f32 to vector<64x32xf32>
      %16 = arith.maximumf %13, %15 : vector<64x32xf32>
      %c0_12 = arith.constant 0 : index
      %c0_13 = arith.constant 0 : index
      %17 = vector.load %arg5[%c0_12, %c0_13] : memref<64x32xf32, #tpu.memory_space<vmem>>, vector<64x32xf32>
      %18 = arith.subf %17, %14 : vector<64x32xf32>
      %cst_14 = arith.constant 0.000000e+00 : f32
      %19 = vector.broadcast %cst_14 : f32 to vector<64x32xf32>
      %20 = arith.maximumf %18, %19 : vector<64x32xf32>
      %c0_15 = arith.constant 0 : index
      %c0_16 = arith.constant 0 : index
      %21 = vector.load %arg6[%c0_15, %c0_16] : memref<64x32xf32, #tpu.memory_space<vmem>>, vector<64x32xf32>
      %cst_17 = arith.constant 0.000000e+00 : f32
      %22 = vector.broadcast %cst_17 : f32 to vector<64x32xf32>
      %23 = arith.maximumf %21, %22 : vector<64x32xf32>
      %c0_18 = arith.constant 0 : index
      %c0_19 = arith.constant 0 : index
      %24 = vector.load %arg7[%c0_18, %c0_19] : memref<1x32xf32, #tpu.memory_space<vmem>>, vector<1x32xf32>
      %25 = vector.broadcast %24 : vector<1x32xf32> to vector<64x32xf32>
      %26 = arith.mulf %16, %25 : vector<64x32xf32>
      %cst_20 = arith.constant dense<0.000000e+00> : vector<64xf32>
      %27 = vector.multi_reduction <add>, %26, %cst_20 [1] : vector<64x32xf32> to vector<64xf32>
      %28 = vector.shape_cast %27 : vector<64xf32> to vector<64x1xf32>
      %29 = arith.negf %28 : vector<64x1xf32>
      %30 = math.exp %29 : vector<64x1xf32>
      %cst_21 = arith.constant 1.000000e+00 : f32
      %31 = vector.broadcast %cst_21 : f32 to vector<64x1xf32>
      %32 = arith.addf %31, %30 : vector<64x1xf32>
      %33 = arith.divf %31, %32 : vector<64x1xf32>
      %c0_22 = arith.constant 0 : index
      %c0_23 = arith.constant 0 : index
      %34 = vector.load %arg8[%c0_22, %c0_23] : memref<1x32xf32, #tpu.memory_space<vmem>>, vector<1x32xf32>
      %35 = vector.broadcast %34 : vector<1x32xf32> to vector<64x32xf32>
      %36 = arith.mulf %20, %35 : vector<64x32xf32>
      %cst_24 = arith.constant dense<0.000000e+00> : vector<64xf32>
      %37 = vector.multi_reduction <add>, %36, %cst_24 [1] : vector<64x32xf32> to vector<64xf32>
      %38 = vector.shape_cast %37 : vector<64xf32> to vector<64x1xf32>
      %39 = arith.negf %38 : vector<64x1xf32>
      %40 = math.exp %39 : vector<64x1xf32>
      %cst_25 = arith.constant 1.000000e+00 : f32
      %41 = vector.broadcast %cst_25 : f32 to vector<64x1xf32>
      %42 = arith.addf %41, %40 : vector<64x1xf32>
      %43 = arith.divf %41, %42 : vector<64x1xf32>
      %c0_26 = arith.constant 0 : index
      %c0_27 = arith.constant 0 : index
      %44 = vector.load %arg9[%c0_26, %c0_27] : memref<1x32xf32, #tpu.memory_space<vmem>>, vector<1x32xf32>
      %45 = vector.broadcast %44 : vector<1x32xf32> to vector<64x32xf32>
      %46 = arith.mulf %23, %45 : vector<64x32xf32>
      %cst_28 = arith.constant dense<0.000000e+00> : vector<64xf32>
      %47 = vector.multi_reduction <add>, %46, %cst_28 [1] : vector<64x32xf32> to vector<64xf32>
      %48 = vector.shape_cast %47 : vector<64xf32> to vector<64x1xf32>
      %49 = arith.negf %48 : vector<64x1xf32>
      %50 = math.exp %49 : vector<64x1xf32>
      %cst_29 = arith.constant 1.000000e+00 : f32
      %51 = vector.broadcast %cst_29 : f32 to vector<64x1xf32>
      %52 = arith.addf %51, %50 : vector<64x1xf32>
      %53 = arith.divf %51, %52 : vector<64x1xf32>
      %c0_30 = arith.constant 0 : index
      %c0_31 = arith.constant 0 : index
      %54 = memref.load %arg2[%c0_30, %c0_31] : memref<3x3xf32, #tpu.memory_space<smem>>
      %55 = vector.broadcast %54 : f32 to vector<64x1xf32>
      %56 = arith.mulf %33, %55 : vector<64x1xf32>
      %c1 = arith.constant 1 : index
      %c0_32 = arith.constant 0 : index
      %57 = memref.load %arg2[%c1, %c0_32] : memref<3x3xf32, #tpu.memory_space<smem>>
      %58 = vector.broadcast %57 : f32 to vector<64x1xf32>
      %59 = arith.mulf %43, %58 : vector<64x1xf32>
      %60 = arith.addf %56, %59 : vector<64x1xf32>
      %c2 = arith.constant 2 : index
      %c0_33 = arith.constant 0 : index
      %61 = memref.load %arg2[%c2, %c0_33] : memref<3x3xf32, #tpu.memory_space<smem>>
      %62 = vector.broadcast %61 : f32 to vector<64x1xf32>
      %63 = arith.mulf %53, %62 : vector<64x1xf32>
      %64 = arith.addf %60, %63 : vector<64x1xf32>
      %cst_34 = arith.constant 0.333333343 : f32
      %65 = vector.broadcast %cst_34 : f32 to vector<64x1xf32>
      %66 = arith.mulf %64, %65 : vector<64x1xf32>
      %c0_35 = arith.constant 0 : index
      %c1_36 = arith.constant 1 : index
      %67 = memref.load %arg2[%c0_35, %c1_36] : memref<3x3xf32, #tpu.memory_space<smem>>
      %68 = vector.broadcast %67 : f32 to vector<64x1xf32>
      %69 = arith.mulf %33, %68 : vector<64x1xf32>
      %c1_37 = arith.constant 1 : index
      %c1_38 = arith.constant 1 : index
      %70 = memref.load %arg2[%c1_37, %c1_38] : memref<3x3xf32, #tpu.memory_space<smem>>
      %71 = vector.broadcast %70 : f32 to vector<64x1xf32>
      %72 = arith.mulf %43, %71 : vector<64x1xf32>
      %73 = arith.addf %69, %72 : vector<64x1xf32>
      %c2_39 = arith.constant 2 : index
      %c1_40 = arith.constant 1 : index
      %74 = memref.load %arg2[%c2_39, %c1_40] : memref<3x3xf32, #tpu.memory_space<smem>>
      %75 = vector.broadcast %74 : f32 to vector<64x1xf32>
      %76 = arith.mulf %53, %75 : vector<64x1xf32>
      %77 = arith.addf %73, %76 : vector<64x1xf32>
      %cst_41 = arith.constant 0.333333343 : f32
      %78 = vector.broadcast %cst_41 : f32 to vector<64x1xf32>
      %79 = arith.mulf %77, %78 : vector<64x1xf32>
      %c0_42 = arith.constant 0 : index
      %c2_43 = arith.constant 2 : index
      %80 = memref.load %arg2[%c0_42, %c2_43] : memref<3x3xf32, #tpu.memory_space<smem>>
      %81 = vector.broadcast %80 : f32 to vector<64x1xf32>
      %82 = arith.mulf %33, %81 : vector<64x1xf32>
      %c1_44 = arith.constant 1 : index
      %c2_45 = arith.constant 2 : index
      %83 = memref.load %arg2[%c1_44, %c2_45] : memref<3x3xf32, #tpu.memory_space<smem>>
      %84 = vector.broadcast %83 : f32 to vector<64x1xf32>
      %85 = arith.mulf %43, %84 : vector<64x1xf32>
      %86 = arith.addf %82, %85 : vector<64x1xf32>
      %c2_46 = arith.constant 2 : index
      %c2_47 = arith.constant 2 : index
      %87 = memref.load %arg2[%c2_46, %c2_47] : memref<3x3xf32, #tpu.memory_space<smem>>
      %88 = vector.broadcast %87 : f32 to vector<64x1xf32>
      %89 = arith.mulf %53, %88 : vector<64x1xf32>
      %90 = arith.addf %86, %89 : vector<64x1xf32>
      %cst_48 = arith.constant 0.333333343 : f32
      %91 = vector.broadcast %cst_48 : f32 to vector<64x1xf32>
      %92 = arith.mulf %90, %91 : vector<64x1xf32>
      %93 = arith.maximumf %66, %79 : vector<64x1xf32>
      %94 = arith.maximumf %93, %92 : vector<64x1xf32>
      %95 = arith.subf %66, %94 : vector<64x1xf32>
      %96 = math.exp %95 : vector<64x1xf32>
      %97 = arith.subf %79, %94 : vector<64x1xf32>
      %98 = math.exp %97 : vector<64x1xf32>
      %99 = arith.subf %92, %94 : vector<64x1xf32>
      %100 = math.exp %99 : vector<64x1xf32>
      %101 = arith.addf %96, %98 : vector<64x1xf32>
      %102 = arith.addf %101, %100 : vector<64x1xf32>
      %103 = tpu.reciprocal %102 {approx = true} : vector<64x1xf32> -> vector<64x1xf32>
      %cst_49 = arith.constant 3.000000e+00 : f32
      %104 = vector.broadcast %cst_49 : f32 to vector<64x1xf32>
      %105 = arith.mulf %103, %104 : vector<64x1xf32>
      %106 = arith.mulf %96, %105 : vector<64x1xf32>
      %107 = vector.broadcast %106 : vector<64x1xf32> to vector<64x32xf32>
      %108 = arith.mulf %107, %16 : vector<64x32xf32>
      %109 = arith.mulf %98, %105 : vector<64x1xf32>
      %110 = vector.broadcast %109 : vector<64x1xf32> to vector<64x32xf32>
      %111 = arith.mulf %110, %20 : vector<64x32xf32>
      %112 = arith.mulf %100, %105 : vector<64x1xf32>
      %113 = vector.broadcast %112 : vector<64x1xf32> to vector<64x32xf32>
      %114 = arith.mulf %113, %23 : vector<64x32xf32>
      %115 = arith.addf %108, %111 : vector<64x32xf32>
      %116 = arith.addf %115, %114 : vector<64x32xf32>
      %c0_50 = arith.constant 0 : index
      %c0_51 = arith.constant 0 : index
      %117 = vector.load %arg10[%c0_50, %c0_51] : memref<64x32xf32, #tpu.memory_space<vmem>>, vector<64x32xf32>
      tpu.vector_store %arg10[%c0_50, %c0_51], %116 {strides = array<i32>} : memref<64x32xf32, #tpu.memory_space<vmem>>, vector<64x32xf32>,
    } else {
    }
    return
  }
  func.func @transform_0(%arg0: i32, %arg1: i32) -> (i32, i32) {
    %c0_i32 = arith.constant 0 : i32
    %c0_i32_0 = arith.constant 0 : i32
    %c0_i32_1 = arith.constant 0 : i32
    return %c0_i32, %c0_i32_0 : i32, i32
  }
  func.func @transform_1(%arg0: i32, %arg1: i32) -> (i32, i32) {
    %c0_i32 = arith.constant 0 : i32
    return %arg0, %arg1 : i32, i32
  }
  func.func @transform_2(%arg0: i32, %arg1: i32) -> (i32, i32) {
    %c0_i32 = arith.constant 0 : i32
    %c0_i32_0 = arith.constant 0 : i32
    return %arg1, %c0_i32 : i32, i32
  }
  func.func @transform_3(%arg0: i32, %arg1: i32) -> (i32, i32) {
    %c0_i32 = arith.constant 0 : i32
    %c0_i32_0 = arith.constant 0 : i32
    return %arg0, %c0_i32 : i32, i32
  }
  func.func @transform_4(%arg0: i32, %arg1: i32) -> (i32, i32) {
    %c0_i32 = arith.constant 0 : i32
    %c0_i32_0 = arith.constant 0 : i32
    return %arg0, %c0_i32 : i32, i32
  }
  func.func @transform_5(%arg0: i32, %arg1: i32) -> (i32, i32) {
    %c0_i32 = arith.constant 0 : i32
    %c0_i32_0 = arith.constant 0 : i32
    %c0_i32_1 = arith.constant 0 : i32
    return %c0_i32, %c0_i32_0 : i32, i32
  }
  func.func @transform_6(%arg0: i32, %arg1: i32) -> (i32, i32) {
    %c0_i32 = arith.constant 0 : i32
    %c0_i32_0 = arith.constant 0 : i32
    %c0_i32_1 = arith.constant 0 : i32
    return %c0_i32, %c0_i32_0 : i32, i32
  }
  func.func @transform_7(%arg0: i32, %arg1: i32) -> (i32, i32) {
    %c0_i32 = arith.constant 0 : i32
    %c0_i32_0 = arith.constant 0 : i32
    %c0_i32_1 = arith.constant 0 : i32
    return %c0_i32, %c0_i32_0 : i32, i32
  }
  func.func @transform_8(%arg0: i32, %arg1: i32) -> (i32, i32) {
    %c0_i32 = arith.constant 0 : i32
    %c0_i32_0 = arith.constant 0 : i32
    return %arg0, %c0_i32 : i32, i32
  }
}

</mosaic_0001>

<bundles_post_ra>
// kernel: tpu_custom_call.1
= control target key start
LH: loop header
LB: loop body
LE: loop exit
PB: predicated region body
PF: predicated region fallthrough
CT: control target
= control target key end

     0   :  { %s2670_s0 = inlined_call_operand.vmem [shape: f32[3,3], index: 0, kind: input, shape index: {}]   ;;  %s2671_s1 = inlined_call_operand.vmem [shape: f32[256,256], index: 1, kind: input, shape index: {}]   ;;  %s2672_s2 = inlined_call_operand.vmem [shape: f32[256,64], index: 2, kind: input, shape index: {}]   ;;  %s2673_s3 = inlined_call_operand.vmem [shape: f32[256,32], index: 3, kind: input, shape index: {}]   ;;  %s2674_s4 = inlined_call_operand.vmem [shape: f32[256,32], index: 4, kind: input, shape index: {}]   ;;  %s2675_s5 = inlined_call_operand.vmem [shape: f32[1,32], index: 5, kind: input, shape index: {}]   ;;  %s2676_s6 = inlined_call_operand.vmem [shape: f32[1,32], index: 6, kind: input, shape index: {}]   ;;  %s2677_s7 = inlined_call_operand.vmem [shape: f32[1,32], index: 7, kind: input, shape index: {}]   ;;  %s2678_s8 = inlined_call_operand.vmem [shape: f32[256,32], index: 8, kind: output, shape index: {}]  }
   0x1   :  { %2722 = sst [smem:[#allocation33_spill]] %s2670_s0 }
   0x2   :  { %2723 = sst [smem:[#allocation34_spill]] %s2671_s1 }
   0x3   :  { %13 = vsyncpa [#allocation4], 0  ;;  %s1979_s27 = smov 0   ;;  %s1981_s28 = smov 0  }
   0x4   :  { %s1983_s29 = smov 0   ;;  %s1985_s30 = smov 0  }
   0x5   :  { %s1987_s9 = smov 0   ;;  %s1989_s10 = smov 0  }
   0x6   :  { %s1991_s11 = smov 0  }
   0x7 LB: > { %s1467_s12 = sadd.s32 4294967295, %s1929_s11   ;;  %s28_s13 = sadd.s32 1, %s1921_s9  ;;  %s1929_s11 = sphi %s1991_s11, %s19_s11   ;;  %s1925_s10 = sphi %s1989_s10, %s2803_s10   ;;  %s1921_s9 = sphi %s1987_s9, %s2802_s9   ;;  %s1917_s30 = sphi %s1985_s30, %s2801_s30   ;;  %s1913_s29 = sphi %s1983_s29, %s2800_s29   ;;  %s1909_s28 = sphi %s1981_s28, %s2799_s28   ;;  %s1905_s27 = sphi %s1979_s27, %s2798_s27  }
   0x8   : > { %p29_p0 = scmp.ge.s32.totalorder %s28_s13, 2  ;;  %s31_s14 = sadd.s32 1, %s1925_s10 }
   0x9   : > { %s61_s15 = sadd.s32 1, %s1909_s28  ;;  %p68_p1 = scmp.ne.s32.totalorder %s1909_s28, %s1905_s27 }
   0xa   : > { %s2805_s13 = smov (%p29_p0, %s28_s13), 0  ;;  %s2807_s14 = smov (!%p29_p0, %s31_s14), %s1925_s10 }
   0xb   : > { %s57_s16 = ssub.s32 %s1921_s9, %s2805_s13  ;;  %p69_p2 = scmp.eq.s32.totalorder %s1929_s11, 0 }
   0xc   : > { %p33_p3 = scmp.ge.s32.totalorder %s2807_s14, 4  ;;  %p1469_p4 = scmp.ge.s32.totalorder %s1929_s11, 1 }
   0xd   : > { %p2027_p5 = por %p69_p2, %p68_p1  ;;  %p252_p6 = scmp.lt.s32.totalorder %s1929_s11, 9 }
   0xe   : > { %s2809_s14 = smov (%p33_p3, %s2807_s14), 0  ;;  %p2040_p8 = scmp.eq.s32.totalorder %s1467_s12, 0 }
   0xf   : > { %p2034_p7 = pnand %p1469_p4, %p252_p6  ;;  %s56_s19 = ssub.s32 %s1925_s10, %s2809_s14 }
  0x10   : > { %s58_s21 = sor.u32 %s57_s16, %s56_s19  ;;  %s2727_s0 = sld [smem:[#allocation33_spill]] }
  0x11   : > { %s2725_s18 = scalar_select %p2034_p7, 1, 0 }
  0x12   : > { %p1631_p9 = pneg %p2034_p7  ;;  %p59_p10 = scmp.eq.s32.totalorder %s58_s21, 0 }
  0x14   : > { %p1632_p11 = pnand %p2040_p8, %p1631_p9 }
  0x15   : > { %s2052_s25 = scalar_select %p59_p10, %s1909_s28, %s61_s15  }
  0x16   : > { %s265_s24 = sshll.u32 %s2727_s0, 4  ;;  %p1858_p13 = pneg %p1632_p11  ;;  %s266_s24 = int_to_ptr.vmem [resolvable:$true] %s265_s24 }
  0x17   : > { %s1856_s26 = scalar_lea.vmem %s266_s24, 64  ;;  %p1864_p2 = scmp.lt.s32.totalorder %s266_s24, %s266_s24 }
  0x18   : > { %p1857_p12 = scmp.ne.s32.totalorder %s266_s24, %s1856_s26  ;;  %p1865_p3 = scmp.lt.s32.totalorder %s1856_s26, %s1856_s26 }
  0x1a   : > { %p1859_p0 = pnand %p1858_p13, %p1857_p12  ;;  %p1866_p4 = por %p1865_p3, %p1864_p2 }
  0x1c   : > { %p1860_p1 = pneg %p1859_p0 }
  0x1e   : > { %p1867_p6 = pnand %p1866_p4, %p1860_p1 }
  0x20   : > { %1870 = shalt.err (!%p1867_p6)
}
  0x21   : > { %s1931_s12 = smov [#allocation3]   ;;  %p1471_p7 = scmp.ge.s32.totalorder %s1929_s11, 8 }
  0x22   : > { %1634 = dma.vmem_to_smem (!%p1632_p11), %s266_s24, 64, %s1931_s12, [#allocation4]  }
  0x23   : > { %281 = sbr.rel (%p1471_p7) target bundleno = 54 (0x36), region = 32 }
  0x28   : > { %284 = sbr.rel (!%p2027_p5) target bundleno = 54 (0x36), region = 36  ;;  %s286_s15 = sand.u32 (%p2027_p5), 1, %s1909_s28  }
  0x29   : > { %s1526_s16 = sshll.u32 (%p2027_p5), %s1925_s10, 4  ;;  %s1472_s19 = sshll.u32 (%p2027_p5), %s286_s15, 6 }
  0x2a   : > { %s291_s21 = sadd.s32 (%p2027_p5), %s1921_s9, %s1526_s16  ;;  %s2728_s1 = sld [smem:[#allocation34_spill]] (%p2027_p5) }
  0x2b   : > { %s1475_s22 = sshll.u32 (%p2027_p5), %s291_s21, 3  ;;  %s288_s24 = scalar_lea.vmem (%p2027_p5), [#allocation5], %s1472_s19 }
  0x30   : > { %s293_s0 = scalar_lea.vmem %s2728_s1, %s1475_s22 }
  0x31   : > { %v336_v0 = vld [vmem:[%s293_s0] sm:$0xff]  ;;  %v338_v1 = vld [vmem:[%s293_s0 + $0x10] sm:$0xff] }
  0x32   : > { %v340_v2 = vld [vmem:[%s293_s0 + $0x20] sm:$0xff]  ;;  %337 = vst [vmem:[%s288_s24] sm:$0xff] %v336_v0  ;;  %339 = vst [vmem:[%s288_s24 + $0x8] sm:$0xff] %v338_v1  ;;  %v342_v3 = vld [vmem:[%s293_s0 + $0x30] sm:$0xff] }
  0x33   : > { %341 = vst [vmem:[%s288_s24 + $0x10] sm:$0xff] %v340_v2  ;;  %v344_v4 = vld [vmem:[%s293_s0 + $0x40] sm:$0xff]  ;;  %v346_v5 = vld [vmem:[%s293_s0 + $0x50] sm:$0xff]  ;;  %343 = vst [vmem:[%s288_s24 + $0x18] sm:$0xff] %v342_v3 }
  0x34   : > { %345 = vst [vmem:[%s288_s24 + $0x20] sm:$0xff] %v344_v4  ;;  %347 = vst [vmem:[%s288_s24 + $0x28] sm:$0xff] %v346_v5  ;;  %v348_v6 = vld [vmem:[%s293_s0 + $0x60] sm:$0xff]  ;;  %v350_v7 = vld [vmem:[%s293_s0 + $0x70] sm:$0xff] }
  0x35   : > { %349 = vst [vmem:[%s288_s24 + $0x30] sm:$0xff] %v348_v6  ;;  %351 = vst [vmem:[%s288_s24 + $0x38] sm:$0xff] %v350_v7 }
  0x36 PF: > { %p2729_p5 = scmp.ne.s32.totalorder %s2725_s18, 0 }
  0x38   : > { %387 = sbr.rel (%p2729_p5) target bundleno = 732 (0x2dc), region = 86 }
  0x3d   : > { %1900 = dma.done.wait (%p2040_p8), [#allocation4], 64  }
  0x3e   : > { %1902 = vsyncadd (%p2040_p8), [#allocation4], 4294967232  ;;  %s394_s17 = sand.u32 1, %s1905_s27  }
  0x3f   : > { %s1478_s12 = sshll.u32 %s394_s17, 6 }
  0x40   : > { %s2070_s15 = scalar_lea.vmem [#allocation5], %s1478_s12 }
  0x41   : > { %400 = sfence }
  0x42   : > { %s1479_s0 = sshll.u32 %s1913_s29, 4  ;;  %s1481_s16 = sshll.u32 %s1917_s30, 3 }
  0x43   : > { %p445_p7 = scmp.lt.s32.totalorder %s1479_s0, 31  ;;  %p451_p9 = scmp.lt.s32.totalorder %s1481_s16, 31 }
  0x44   : > { %p1487_p8 = scmp.ne.s32.totalorder %s1913_s29, 0 }
  0x45   : > { %s2811_s0 = smov (!%p445_p7, %s1479_s0), 31  ;;  %s2813_s16 = smov (!%p451_p9, %s1481_s16), 31 }
  0x46   : > { %s1480_s18 = sshll.u32 %s2811_s0, 3  ;;  %s1482_s22 = sshll.u32 %s2813_s16, 3 }
  0x47   : > { %s2077_s20 = scalar_lea.vmem %s2672_s2, %s1480_s18  ;;  %s2082_s26 = scalar_lea.vmem %s2673_s3, %s1482_s22 }
  0x48   : > { %s2087_s30 = scalar_lea.vmem %s2674_s4, %s1482_s22  ;;  %s2092_s0 = scalar_lea.vmem %s2678_s8, %s1482_s22 }
  0x49   : > { %471 = sbr.rel (%p1487_p8) target bundleno = 83 (0x53), region = 98 }
  0x4e   : > { %vm472_vm0 = vcmask 523264   ;;  %v1932_v8 = vmov 0.0  }
  0x4f   : > { %473 = vst.msk [vmem:[#allocation2] sm:$0xff] %vm472_vm0, %v1932_v8  ;;  %474 = vst.msk [vmem:[#allocation2 + $0x8] sm:$0xff] %vm472_vm0, %v1932_v8 }
  0x50   : > { %475 = vst.msk [vmem:[#allocation2 + $0x10] sm:$0xff] %vm472_vm0, %v1932_v8  ;;  %476 = vst.msk [vmem:[#allocation2 + $0x18] sm:$0xff] %vm472_vm0, %v1932_v8 }
  0x51   : > { %477 = vst.msk [vmem:[#allocation2 + $0x20] sm:$0xff] %vm472_vm0, %v1932_v8  ;;  %478 = vst.msk [vmem:[#allocation2 + $0x28] sm:$0xff] %vm472_vm0, %v1932_v8 }
  0x52   : > { %479 = vst.msk [vmem:[#allocation2 + $0x30] sm:$0xff] %vm472_vm0, %v1932_v8  ;;  %480 = vst.msk [vmem:[#allocation2 + $0x38] sm:$0xff] %vm472_vm0, %v1932_v8 }
  0x53 PF: > { %v512_v9 = vld [vmem:[%s2077_s20 + $0x78] sm:$0xff]  ;;  %v511_v10 = vld [vmem:[%s2077_s20 + $0x70] sm:$0xff]  ;;  %v510_v11 = vld [vmem:[%s2077_s20 + $0x68] sm:$0xff]  ;;  %vm626_vm1 = vcmask 523264   ;;  %p1488_p10 = scmp.ne.s32.totalorder %s1913_s29, 1 }
  0x54   : > { %1551 = vmatprep.subr.mxu0 %v512_v9  ;;  %1595 = vmatprep.subr.mxu1 %v512_v9  ;;  %v509_v12 = vld [vmem:[%s2077_s20 + $0x60] sm:$0xff]  ;;  %v508_v13 = vld [vmem:[%s2077_s20 + $0x58] sm:$0xff]  ;;  %v507_v14 = vld [vmem:[%s2077_s20 + $0x50] sm:$0xff] }
  0x55   : > { %1552 = vmatpush3.msra.mxu0 %v512_v9  ;;  %1611 = vmatpush3.msra.mxu1 %v512_v9  ;;  %v506_v15 = vld [vmem:[%s2077_s20 + $0x48] sm:$0xff]  ;;  %v505_v16 = vld [vmem:[%s2077_s20 + $0x40] sm:$0xff]  ;;  %v504_v17 = vld [vmem:[%s2077_s20 + $0x38] sm:$0xff] }
  0x56   : > { %1553 = vmatprep.subr.mxu0 %v511_v10  ;;  %1596 = vmatprep.subr.mxu1 %v511_v10  ;;  %v503_v18 = vld [vmem:[%s2077_s20 + $0x30] sm:$0xff]  ;;  %v502_v19 = vld [vmem:[%s2077_s20 + $0x28] sm:$0xff]  ;;  %v501_v20 = vld [vmem:[%s2077_s20 + $0x20] sm:$0xff] }
  0x57   : > { %1554 = vmatpush3.msra.mxu0 %v511_v10  ;;  %1612 = vmatpush3.msra.mxu1 %v511_v10  ;;  %v500_v21 = vld [vmem:[%s2077_s20 + $0x18] sm:$0xff]  ;;  %v499_v22 = vld [vmem:[%s2077_s20 + $0x10] sm:$0xff]  ;;  %v498_v23 = vld [vmem:[%s2077_s20 + $0x8] sm:$0xff] }
  0x58   : > { %1555 = vmatprep.subr.mxu0 %v510_v11  ;;  %1597 = vmatprep.subr.mxu1 %v510_v11  ;;  %v497_v24 = vld [vmem:[%s2077_s20] sm:$0xff]  ;;  %v490_v27 = vld [vmem:[%s2070_s15 + $0x8] sm:$0xff]  ;;  %v491_v29 = vld [vmem:[%s2070_s15 + $0x10] sm:$0xff] }
  0x59   : > { %1556 = vmatpush3.msra.mxu0 %v510_v11  ;;  %1613 = vmatpush3.msra.mxu1 %v510_v11  ;;  %v489_v25 = vld [vmem:[%s2070_s15] sm:$0xff]  ;;  %v494_v28 = vld [vmem:[%s2070_s15 + $0x28] sm:$0xff]  ;;  %v495_v30 = vld [vmem:[%s2070_s15 + $0x30] sm:$0xff] }
  0x5a   : > { %1557 = vmatprep.subr.mxu0 %v509_v12  ;;  %1598 = vmatprep.subr.mxu1 %v509_v12  ;;  %v493_v26 = vld [vmem:[%s2070_s15 + $0x20] sm:$0xff]  ;;  %v492_v31 = vld [vmem:[%s2070_s15 + $0x18] sm:$0xff]  ;;  %v482_v33 = vld [vmem:[#allocation2 + $0x8] sm:$0xff] }
  0x5b   : > { %1558 = vmatpush3.msra.mxu0 %v509_v12  ;;  %1614 = vmatpush3.msra.mxu1 %v509_v12  ;;  %v496_v32 = vld [vmem:[%s2070_s15 + $0x38] sm:$0xff]  ;;  %v486_v34 = vld [vmem:[#allocation2 + $0x28] sm:$0xff]  ;;  %v481_v37 = vld [vmem:[#allocation2] sm:$0xff] }
  0x5c   : > { %1559 = vmatprep.subr.mxu0 %v508_v13  ;;  %1599 = vmatprep.subr.mxu1 %v508_v13  ;;  %v485_v38 = vld [vmem:[#allocation2 + $0x20] sm:$0xff]  ;;  %v484_v43 = vld [vmem:[#allocation2 + $0x18] sm:$0xff]  ;;  %v483_v49 = vld [vmem:[#allocation2 + $0x10] sm:$0xff] }
  0x5d   : > { %1560 = vmatpush3.msra.mxu0 %v508_v13  ;;  %1615 = vmatpush3.msra.mxu1 %v508_v13  ;;  %v488_v44 = vld [vmem:[#allocation2 + $0x38] sm:$0xff]  ;;  %v487_v50 = vld [vmem:[#allocation2 + $0x30] sm:$0xff] }
  0x5e   : > { %1561 = vmatprep.subr.mxu0 %v507_v14  ;;  %1600 = vmatprep.subr.mxu1 %v507_v14 }
  0x5f   : > { %1562 = vmatpush3.msra.mxu0 %v507_v14  ;;  %1616 = vmatpush3.msra.mxu1 %v507_v14 }
  0x60   : > { %1563 = vmatprep.subr.mxu0 %v506_v15  ;;  %1601 = vmatprep.subr.mxu1 %v506_v15 }
  0x61   : > { %1564 = vmatpush3.msra.mxu0 %v506_v15  ;;  %1617 = vmatpush3.msra.mxu1 %v506_v15 }
  0x62   : > { %1565 = vmatprep.subr.mxu0 %v505_v16  ;;  %1602 = vmatprep.subr.mxu1 %v505_v16 }
  0x63   : > { %1566 = vmatpush3.msra.mxu0 %v505_v16  ;;  %1618 = vmatpush3.msra.mxu1 %v505_v16 }
  0x64   : > { %1567 = vmatprep.subr.mxu0 %v504_v17  ;;  %1603 = vmatprep.subr.mxu1 %v504_v17 }
  0x65   : > { %1568 = vmatpush3.msra.mxu0 %v504_v17  ;;  %1619 = vmatpush3.msra.mxu1 %v504_v17 }
  0x66   : > { %1569 = vmatprep.subr.mxu0 %v503_v18  ;;  %1604 = vmatprep.subr.mxu1 %v503_v18 }
  0x67   : > { %1570 = vmatpush3.msra.mxu0 %v503_v18  ;;  %1620 = vmatpush3.msra.mxu1 %v503_v18 }
  0x68   : > { %1571 = vmatprep.subr.mxu0 %v502_v19  ;;  %1605 = vmatprep.subr.mxu1 %v502_v19 }
  0x69   : > { %1572 = vmatpush3.msra.mxu0 %v502_v19  ;;  %1621 = vmatpush3.msra.mxu1 %v502_v19 }
  0x6a   : > { %1573 = vmatprep.subr.mxu0 %v501_v20  ;;  %1606 = vmatprep.subr.mxu1 %v501_v20 }
  0x6b   : > { %1574 = vmatpush3.msra.mxu0 %v501_v20  ;;  %1622 = vmatpush3.msra.mxu1 %v501_v20 }
  0x6c   : > { %1575 = vmatprep.subr.mxu0 %v500_v21  ;;  %1607 = vmatprep.subr.mxu1 %v500_v21 }
  0x6d   : > { %1576 = vmatpush3.msra.mxu0 %v500_v21  ;;  %1623 = vmatpush3.msra.mxu1 %v500_v21 }
  0x6e   : > { %1577 = vmatprep.subr.mxu0 %v499_v22  ;;  %1608 = vmatprep.subr.mxu1 %v499_v22 }
  0x6f   : > { %1578 = vmatpush3.msra.mxu0 %v499_v22  ;;  %1624 = vmatpush3.msra.mxu1 %v499_v22 }
  0x70   : > { %1579 = vmatprep.subr.mxu0 %v498_v23  ;;  %1609 = vmatprep.subr.mxu1 %v498_v23 }
  0x71   : > { %1580 = vmatpush3.msra.mxu0 %v498_v23  ;;  %1625 = vmatpush3.msra.mxu1 %v498_v23 }
  0x72   : > { %1581 = vmatprep.subr.mxu0 %v497_v24  ;;  %1610 = vmatprep.subr.mxu1 %v497_v24 }
  0x73   : > { %1582 = vmatpush3.msra.mxu0 %v497_v24  ;;  %1626 = vmatpush3.msra.mxu1 %v497_v24 }
  0x74   : > { %1583 = vmatprep.mubr.f32.mxu0 %v489_v25  ;;  %1589 = vmatprep.mubr.f32.mxu1 %v493_v26 }
  0x75   : > { %1584 = vmatmul.mubr.f32.vlgmr.msra.gmra.mxu0 %v490_v27  ;;  %1590 = vmatmul.mubr.f32.vlgmr.msra.gmra.mxu1 %v494_v28 }
  0x76   : > { %1586 = vmatprep.mubr.f32.mxu0 %v491_v29  ;;  %1592 = vmatprep.mubr.f32.mxu1 %v495_v30 }
  0x79   : > { %1587 = vmatmul.mubr.f32.gmra.mxu0 %v492_v31  ;;  %1593 = vmatmul.mubr.f32.gmra.mxu1 %v496_v32 }
 0x135   : > { %v1585_v35 = vpop.f32.mrf.mxu0  ;;  %v1591_v36 = vpop.f32.mrf.mxu1 }
 0x136   : > { %v619_v39 = vadd.f32 %v1585_v35, %v482_v33  ;;  %v623_v40 = vadd.f32 %v1591_v36, %v486_v34 }
 0x137   : > { %v579_v41 = vpop.f32.mrf.mxu0  ;;  %v599_v42 = vpop.f32.mrf.mxu1 }
 0x138   : > { %628 = vst.msk [vmem:[#allocation2 + $0x8] sm:$0xff] %vm626_vm1, %v619_v39  ;;  %632 = vst.msk [vmem:[#allocation2 + $0x28] sm:$0xff] %vm626_vm1, %v623_v40  ;;  %v618_v45 = vadd.f32 %v579_v41, %v481_v37  ;;  %v622_v46 = vadd.f32 %v599_v42, %v485_v38 }
 0x139   : > { %v1588_v47 = vpop.f32.mrf.mxu0  ;;  %v1594_v48 = vpop.f32.mrf.mxu1 }
 0x13a   : > { %627 = vst.msk [vmem:[#allocation2] sm:$0xff] %vm626_vm1, %v618_v45  ;;  %631 = vst.msk [vmem:[#allocation2 + $0x20] sm:$0xff] %vm626_vm1, %v622_v46  ;;  %v621_v51 = vadd.f32 %v1588_v47, %v484_v43  ;;  %v625_v52 = vadd.f32 %v1594_v48, %v488_v44  ;;  %638 = sbr.rel (%p1488_p10) target bundleno = 732 (0x2dc), region = 102 }
 0x13b   : > { %v589_v53 = vpop.f32.mrf.mxu0  ;;  %v609_v54 = vpop.f32.mrf.mxu1 }
 0x13c   : > { %630 = vst.msk [vmem:[#allocation2 + $0x18] sm:$0xff] %vm626_vm1, %v621_v51  ;;  %634 = vst.msk [vmem:[#allocation2 + $0x38] sm:$0xff] %vm626_vm1, %v625_v52  ;;  %v620_v55 = vadd.f32 %v589_v53, %v483_v49  ;;  %v624_v56 = vadd.f32 %v609_v54, %v487_v50 }
 0x13e   : > { %629 = vst.msk [vmem:[#allocation2 + $0x10] sm:$0xff] %vm626_vm1, %v620_v55  ;;  %633 = vst.msk [vmem:[#allocation2 + $0x30] sm:$0xff] %vm626_vm1, %v624_v56 }
 0x13f   : > { %s1933_s1 = smov 96   ;;  %v2134_v59 = vld [vmem:[#allocation2 + $0x8] sm:$0xff]  ;;  %v1489_v2 = vld [vmem:[%s2675_s5] ss:$0 sm:$0xff]  ;;  %vm742_vm2 = vcmask 261120   ;;  %v2195_v26 = vld [vmem:[%s2087_s30 + $0x10] sm:$0xff] }
 0x140   : > { %2732 = vst [vmem:[#allocation9_spill] sm:$0xff] %v2134_v59  ;;  %v2142_v62 = vld [vmem:[#allocation2 + $0x28] sm:$0xff]  ;;  %v2691_v5 = vmax.f32 %v2134_v59, 0.0  ;;  %v2176_v17 = vld [vmem:[%s2087_s30] sm:$0xff]  ;;  %2740 = vst [vmem:[#allocation17_spill] sm:$0xff] %v2195_v26  ;;  %v2692_v32 = vmax.f32 %v2195_v26, 0.0 }
 0x141   : > { %v2128_v57 = vld [vmem:[#allocation2] sm:$0xff]  ;;  %2735 = vst [vmem:[#allocation12_spill] sm:$0xff] %v2142_v62  ;;  %v2685_v11 = vmax.f32 %v2142_v62, 0.0  ;;  %2738 = vst [vmem:[#allocation15_spill] sm:$0xff] %v2176_v17  ;;  %v2694_v23 = vmax.f32 %v2176_v17, 0.0  ;;  %v2187_v24 = vld [vmem:[%s2087_s30 + $0x8] sm:$0xff] }
 0x142   : > { %2730 = vst [vmem:[#allocation7_spill] sm:$0xff] %v2128_v57  ;;  %671 = vrot.lane.b32.xlu0 %v2128_v57, %s1933_s1  ;;  %v2140_v61 = vld [vmem:[#allocation2 + $0x20] sm:$0xff]  ;;  %v2695_v1 = vmax.f32 %v2128_v57, 0.0  ;;  %v735_v10 = vmul.f32 %v1489_v2, %v2691_v5  ;;  %2739 = vst [vmem:[#allocation16_spill] sm:$0xff] %v2187_v24  ;;  %v2690_v29 = vmax.f32 %v2187_v24, 0.0  ;;  %v2207_v33 = vld [vmem:[%s2087_s30 + $0x18] sm:$0xff] }
 0x143   : > { %v2136_v60 = vld [vmem:[#allocation2 + $0x18] sm:$0xff]  ;;  %2734 = vst [vmem:[#allocation11_spill] sm:$0xff] %v2140_v61  ;;  %v2689_v9 = vmax.f32 %v2140_v61, 0.0  ;;  %v739_v20 = vmul.f32 %v1489_v2, %v2685_v11  ;;  %v2192_v25 = vld [vmem:[%s2677_s7] ss:$0 sm:$0xff]  ;;  %2741 = vst [vmem:[#allocation18_spill] sm:$0xff] %v2207_v33 }
 0x144   : > { %2733 = vst [vmem:[#allocation10_spill] sm:$0xff] %v2136_v60  ;;  %v2148_v0 = vld [vmem:[#allocation2 + $0x38] sm:$0xff]  ;;  %v734_v4 = vmul.f32 %v1489_v2, %v2695_v1  ;;  %v2687_v6 = vmax.f32 %v2136_v60, 0.0  ;;  %v746_v15 = vsel %vm742_vm2, %v735_v10, 0.0  ;;  %v909_v31 = vmul.f32 %v2192_v25, %v2694_v23  ;;  %v2210_v34 = vld [vmem:[%s2087_s30 + $0x20] sm:$0xff]  ;;  %v2223_v41 = vld [vmem:[%s2087_s30 + $0x28] sm:$0xff] }
 0x145   : > { %v2130_v58 = vld [vmem:[#allocation2 + $0x10] sm:$0xff]  ;;  %2737 = vst [vmem:[#allocation14_spill] sm:$0xff] %v2148_v0  ;;  %v738_v16 = vmul.f32 %v1489_v2, %v2689_v9  ;;  %v2681_v18 = vmax.f32 %v2148_v0, 0.0  ;;  %v758_v27 = vsel %vm742_vm2, %v739_v20, 0.0  ;;  %2742 = vst [vmem:[#allocation19_spill] sm:$0xff] %v2210_v34  ;;  %v910_v36 = vmul.f32 %v2192_v25, %v2690_v29  ;;  %v655_v51 = vld [vmem:[%s2082_s26] sm:$0xff] }
 0x146   : > { %2731 = vst [vmem:[#allocation8_spill] sm:$0xff] %v2130_v58  ;;  %675 = vrot.lane.b32.xlu1 %v2130_v58, %s1933_s1  ;;  %673 = vrot.lane.b32.xlu0 %v2134_v59, %s1933_s1  ;;  %v2146_v63 = vld [vmem:[#allocation2 + $0x30] sm:$0xff]  ;;  %v2693_v3 = vmax.f32 %v2130_v58, 0.0  ;;  %v743_v7 = vsel %vm742_vm2, %v734_v4, 0.0  ;;  %v737_v13 = vmul.f32 %v1489_v2, %v2687_v6  ;;  %v2686_v37 = vmax.f32 %v2207_v33, 0.0  ;;  %2743 = vst [vmem:[#allocation20_spill] sm:$0xff] %v2223_v41 }
 0x147   : > { %2736 = vst [vmem:[#allocation13_spill] sm:$0xff] %v2146_v63  ;;  %v2683_v14 = vmax.f32 %v2146_v63, 0.0  ;;  %v755_v21 = vsel %vm742_vm2, %v738_v16, 0.0  ;;  %v741_v28 = vmul.f32 %v1489_v2, %v2681_v18  ;;  %v917_v38 = vsel %vm742_vm2, %v909_v31, 0.0  ;;  %v657_v52 = vld [vmem:[%s2082_s26 + $0x10] sm:$0xff]  ;;  %v658_v4 = vld [vmem:[%s2082_s26 + $0x18] sm:$0xff] }
 0x148   : > { %v736_v8 = vmul.f32 %v1489_v2, %v2693_v3  ;;  %v752_v19 = vsel %vm742_vm2, %v737_v13, 0.0  ;;  %v911_v39 = vmul.f32 %v2192_v25, %v2692_v32  ;;  %v2688_v40 = vmax.f32 %v2210_v34, 0.0  ;;  %s2299_s20 = sld [smem:[#allocation3]] }
 0x149   : > { %v740_v22 = vmul.f32 %v1489_v2, %v2683_v14  ;;  %v764_v35 = vsel %vm742_vm2, %v741_v28, 0.0  ;;  %v920_v42 = vsel %vm742_vm2, %v910_v36, 0.0  ;;  %v912_v43 = vmul.f32 %v2192_v25, %v2686_v37  ;;  %v656_v2 = vld [vmem:[%s2082_s26 + $0x8] sm:$0xff]  ;;  %s2301_s22 = sld [smem:[#allocation3 + $0x1]] }
 0x14a   : > { %677 = vrot.lane.b32.xlu1 %v2136_v60, %s1933_s1  ;;  %679 = vrot.lane.b32.xlu0 %v2140_v61, %s1933_s1  ;;  %v749_v12 = vsel %vm742_vm2, %v736_v8, 0.0  ;;  %v2684_v44 = vmax.f32 %v2223_v41, 0.0  ;;  %v923_v45 = vsel %vm742_vm2, %v911_v39, 0.0  ;;  %v913_v46 = vmul.f32 %v2192_v25, %v2688_v40  ;;  %s2303_s27 = sld [smem:[#allocation3 + $0x2]] }
 0x14b   : > { %v761_v30 = vsel %vm742_vm2, %v740_v22, 0.0  ;;  %v926_v47 = vsel %vm742_vm2, %v912_v43, 0.0  ;;  %v660_v22 = vld [vmem:[%s2082_s26 + $0x28] sm:$0xff]  ;;  %s2305_s23 = sld [smem:[#allocation3 + $0x100]] }
 0x14c   : > { %v914_v48 = vmul.f32 %v2192_v25, %v2684_v44  ;;  %v929_v49 = vsel %vm742_vm2, %v913_v46, 0.0  ;;  %v661_v46 = vld [vmem:[%s2082_s26 + $0x30] sm:$0xff]  ;;  %s2309_s24 = sld [smem:[#allocation3 + $0x102]] }
 0x14d   : > { %s2311_s17 = sld [smem:[#allocation3 + $0x80]] }
 0x14e   : > { %681 = vrot.lane.b32.xlu1 %v2142_v62, %s1933_s1  ;;  %683 = vrot.lane.b32.xlu0 %v2146_v63, %s1933_s1  ;;  %v932_v50 = vsel %vm742_vm2, %v914_v48, 0.0  ;;  %s2315_s12 = sld [smem:[#allocation3 + $0x82]] }
 0x152   : > { %685 = vrot.lane.b32.xlu1 %v2148_v0, %s1933_s1 }
 0x16d   : > { %744 = vadd.xlane.f32.xlu0 %v743_v7  ;;  %v1498_v7 = vld [vmem:[%s2676_s6] ss:$0 sm:$0xff] }
 0x171   : > { %750 = vadd.xlane.f32.xlu0 %v749_v12 }
 0x175   : > { %753 = vadd.xlane.f32.xlu0 %v752_v19 }
 0x176   : > { %747 = vadd.xlane.f32.xlu1 %v746_v15 }
 0x179   : > { %759 = vadd.xlane.f32.xlu0 %v758_v27 }
 0x17a   : > { %756 = vadd.xlane.f32.xlu1 %v755_v21  ;;  %v659_v21 = vld [vmem:[%s2082_s26 + $0x20] sm:$0xff] }
 0x17d   : > { %765 = vadd.xlane.f32.xlu0 %v764_v35 }
 0x17e   : > { %762 = vadd.xlane.f32.xlu1 %v761_v30 }
 0x181   : > { %921 = vadd.xlane.f32.xlu0 %v920_v42 }
 0x182   : > { %918 = vadd.xlane.f32.xlu1 %v917_v38 }
 0x185   : > { %927 = vadd.xlane.f32.xlu0 %v926_v47  ;;  %v662_v47 = vld [vmem:[%s2082_s26 + $0x38] sm:$0xff]  ;;  %s2307_s26 = sld [smem:[#allocation3 + $0x101]] }
 0x186   : > { %924 = vadd.xlane.f32.xlu1 %v923_v45  ;;  %v2264_v45 = vld [vmem:[%s2087_s30 + $0x30] sm:$0xff] }
 0x187   : > { %2748 = vst [vmem:[#allocation25_spill] sm:$0xff] %v2264_v45 }
 0x189   : > { %933 = vadd.xlane.f32.xlu0 %v932_v50 }
 0x18a   : > { %930 = vadd.xlane.f32.xlu1 %v929_v49 }
 0x1b4   : > { %v672_v53 = vpop.permute.xlu0 %671 }
 0x1b5   : > { %v695_v55 = vsub.f32 %v655_v51, %v672_v53 }
 0x1b7   : > { %v2247_v8 = vmax.f32 %v695_v55, 0.0 }
 0x1b8   : > { %v676_v54 = vpop.permute.xlu1 %675  ;;  %v674_v12 = vpop.permute.xlu0 %673 }
 0x1b9   : > { %v697_v56 = vsub.f32 %v657_v52, %v676_v54  ;;  %2744 = vst [vmem:[#allocation21_spill] sm:$0xff] %v2247_v8  ;;  %v696_v15 = vsub.f32 %v656_v2, %v674_v12  ;;  %v822_v19 = vmul.f32 %v1498_v7, %v2247_v8  ;;  %v2682_v54 = vmax.f32 %v2264_v45, 0.0  ;;  %v2278_v12 = vld [vmem:[%s2087_s30 + $0x38] sm:$0xff]  ;;  %s2313_s30 = sld [smem:[#allocation3 + $0x81]] }
 0x1ba   : > { %2751 = vst [vmem:[#allocation28_spill] sm:$0xff] %v2278_v12 }
 0x1bb   : > { %v2249_v10 = vmax.f32 %v697_v56, 0.0  ;;  %v2255_v27 = vmax.f32 %v696_v15, 0.0  ;;  %v830_v30 = vsel %vm742_vm2, %v822_v19, 0.0  ;;  %v2680_v19 = vmax.f32 %v2278_v12, 0.0 }
 0x1bc   : > { %v678_v13 = vpop.permute.xlu1 %677  ;;  %831 = vadd.xlane.f32.xlu1 %v830_v30  ;;  %v680_v31 = vpop.permute.xlu0 %679 }
 0x1bd   : > { %2745 = vst [vmem:[#allocation22_spill] sm:$0xff] %v2249_v10  ;;  %v698_v16 = vsub.f32 %v658_v4, %v678_v13  ;;  %v824_v20 = vmul.f32 %v1498_v7, %v2249_v10  ;;  %2746 = vst [vmem:[#allocation23_spill] sm:$0xff] %v2255_v27  ;;  %v699_v38 = vsub.f32 %v659_v21, %v680_v31 }
 0x1be   : > { %v823_v42 = vmul.f32 %v1498_v7, %v2255_v27 }
 0x1bf   : > { %v2257_v28 = vmax.f32 %v698_v16, 0.0  ;;  %v836_v36 = vsel %vm742_vm2, %v824_v20, 0.0  ;;  %v2268_v48 = vmax.f32 %v699_v38, 0.0  ;;  %v916_v38 = vmul.f32 %v2192_v25, %v2680_v19 }
 0x1c0   : > { %v682_v35 = vpop.permute.xlu1 %681  ;;  %v833_v50 = vsel %vm742_vm2, %v823_v42, 0.0  ;;  %837 = vadd.xlane.f32.xlu1 %v836_v36  ;;  %v684_v51 = vpop.permute.xlu0 %683 }
 0x1c1   : > { %2747 = vst [vmem:[#allocation24_spill] sm:$0xff] %v2257_v28  ;;  %v700_v39 = vsub.f32 %v660_v22, %v682_v35  ;;  %v825_v43 = vmul.f32 %v1498_v7, %v2257_v28  ;;  %2749 = vst [vmem:[#allocation26_spill] sm:$0xff] %v2268_v48  ;;  %834 = vadd.xlane.f32.xlu0 %v833_v50  ;;  %v701_v55 = vsub.f32 %v661_v46, %v684_v51 }
 0x1c2   : > { %v826_v2 = vmul.f32 %v1498_v7, %v2268_v48  ;;  %v915_v22 = vmul.f32 %v2192_v25, %v2682_v54 }
 0x1c3   : > { %v2270_v49 = vmax.f32 %v700_v39, 0.0  ;;  %v839_v53 = vsel %vm742_vm2, %v825_v43, 0.0  ;;  %v2280_v13 = vmax.f32 %v701_v55, 0.0  ;;  %v938_v39 = vsel %vm742_vm2, %v916_v38, 0.0 }
 0x1c4   : > { %v686_v52 = vpop.permute.xlu1 %685  ;;  %v842_v16 = vsel %vm742_vm2, %v826_v2, 0.0  ;;  %v935_v35 = vsel %vm742_vm2, %v915_v22, 0.0 }
 0x1c5   : > { %2750 = vst [vmem:[#allocation27_spill] sm:$0xff] %v2270_v49  ;;  %v702_v56 = vsub.f32 %v662_v47, %v686_v52  ;;  %v827_v4 = vmul.f32 %v1498_v7, %v2270_v49  ;;  %2752 = vst [vmem:[#allocation29_spill] sm:$0xff] %v2280_v13  ;;  %843 = vadd.xlane.f32.xlu1 %v842_v16  ;;  %840 = vadd.xlane.f32.xlu0 %v839_v53 }
 0x1c6   : > { %v828_v20 = vmul.f32 %v1498_v7, %v2280_v13 }
 0x1c7   : > { %v2282_v15 = vmax.f32 %v702_v56, 0.0  ;;  %v845_v21 = vsel %vm742_vm2, %v827_v4, 0.0 }
 0x1c8   : > { %v848_v31 = vsel %vm742_vm2, %v828_v20, 0.0 }
 0x1c9   : > { %2753 = vst [vmem:[#allocation30_spill] sm:$0xff] %v2282_v15  ;;  %v829_v30 = vmul.f32 %v1498_v7, %v2282_v15  ;;  %849 = vadd.xlane.f32.xlu1 %v848_v31  ;;  %846 = vadd.xlane.f32.xlu0 %v845_v21 }
 0x1cb   : > { %v851_v36 = vsel %vm742_vm2, %v829_v30, 0.0 }
 0x1cd   : > { %936 = vadd.xlane.f32.xlu1 %v935_v35  ;;  %852 = vadd.xlane.f32.xlu0 %v851_v36 }
 0x1d1   : > { %939 = vadd.xlane.f32.xlu0 %v938_v39 }
 0x1f6   : > { %v745_v42 = vpop.xlane.xlu0 %744 }
 0x1f7   : > { %v1490_v52 = vmul.f32 -1.442695, %v745_v42 }
 0x1f9   : > { %1696 = vpow2.f32 %v1490_v52 }
 0x1fa   : > { %v751_v43 = vpop.xlane.xlu0 %750 }
 0x1fb   : > { %v1492_v55 = vmul.f32 -1.442695, %v751_v43 }
 0x1fd   : > { %1698 = vpow2.f32 %v1492_v55 }
 0x1fe   : > { %v754_v46 = vpop.xlane.xlu0 %753 }
 0x1ff   : > { %v748_v7 = vpop.xlane.xlu1 %747  ;;  %v1493_v4 = vmul.f32 -1.442695, %v754_v46 }
 0x200   : > { %v1491_v2 = vmul.f32 -1.442695, %v748_v7 }
 0x202   : > { %v760_v50 = vpop.xlane.xlu0 %759  ;;  %1700 = vpow2.f32 %v1491_v2 }
 0x203   : > { %v757_v47 = vpop.xlane.xlu1 %756  ;;  %v1495_v20 = vmul.f32 -1.442695, %v760_v50  ;;  %1702 = vpow2.f32 %v1493_v4 }
 0x204   : > { %v1494_v25 = vmul.f32 -1.442695, %v757_v47 }
 0x206   : > { %v766_v53 = vpop.xlane.xlu0 %765  ;;  %1704 = vpow2.f32 %v1494_v25  ;;  %v1697_v42 = vpop.eup %1696 }
 0x207   : > { %v763_v51 = vpop.xlane.xlu1 %762  ;;  %1706 = vpow2.f32 %v1495_v20  ;;  %v791_v47 = vadd.f32 1.0, %v1697_v42 }
 0x208   : > { %v1496_v21 = vmul.f32 -1.442695, %v763_v51  ;;  %v1497_v51 = vmul.f32 -1.442695, %v766_v53 }
 0x20a   : > { %v922_v16 = vpop.xlane.xlu0 %921  ;;  %1708 = vpow2.f32 %v1496_v21  ;;  %v1699_v46 = vpop.eup %1698 }
 0x20b   : > { %v919_v56 = vpop.xlane.xlu1 %918  ;;  %v1509_v36 = vmul.f32 -1.442695, %v922_v16  ;;  %v793_v2 = vadd.f32 1.0, %v1699_v46 }
 0x20c   : > { %v1508_v30 = vmul.f32 -1.442695, %v919_v56 }
 0x20e   : > { %v928_v35 = vpop.xlane.xlu0 %927  ;;  %1710 = vpow2.f32 %v1508_v30 }
 0x20f   : > { %v925_v22 = vpop.xlane.xlu1 %924  ;;  %v1511_v43 = vmul.f32 -1.442695, %v928_v35  ;;  %v1701_v50 = vpop.eup %1700 }
 0x210   : > { %v1510_v31 = vmul.f32 -1.442695, %v925_v22  ;;  %v1703_v52 = vpop.eup %1702  ;;  %v792_v4 = vadd.f32 1.0, %v1701_v50 }
 0x211   : > { %v794_v16 = vadd.f32 1.0, %v1703_v52 }
 0x212   : > { %1712 = vpow2.f32 %v1510_v31  ;;  %v934_v7 = vpop.xlane.xlu0 %933 }
 0x213   : > { %v931_v38 = vpop.xlane.xlu1 %930  ;;  %1714 = vpow2.f32 %v1509_v36  ;;  %v1513_v55 = vmul.f32 -1.442695, %v934_v7  ;;  %v1705_v56 = vpop.eup %1704 }
 0x214   : > { %v1512_v39 = vmul.f32 -1.442695, %v931_v38  ;;  %v1707_v25 = vpop.eup %1706  ;;  %v795_v21 = vadd.f32 1.0, %v1705_v56 }
 0x215   : > { %v796_v30 = vadd.f32 1.0, %v1707_v25 }
 0x216   : > { %1716 = vpow2.f32 %v1512_v39 }
 0x217   : > { %1718 = vpow2.f32 %v1511_v43  ;;  %v1709_v20 = vpop.eup %1708 }
 0x218   : > { %1720 = vrcp.f32 %v791_v47  ;;  %v797_v53 = vadd.f32 1.0, %v1709_v20 }
 0x219   : > { %1722 = vpow2.f32 %v1497_v51 }
 0x21a   : > { %1724 = vpow2.f32 %v1513_v55 }
 0x21b   : > { %v1711_v22 = vpop.eup %1710  ;;  %1726 = vrcp.f32 %v793_v2 }
 0x21c   : > { %1728 = vrcp.f32 %v792_v4  ;;  %v965_v38 = vadd.f32 1.0, %v1711_v22 }
 0x21d   : > { %1730 = vrcp.f32 %v794_v16 }
 0x21e   : > { %1732 = vrcp.f32 %v795_v21 }
 0x21f   : > { %v1713_v36 = vpop.eup %1712 }
 0x220   : > { %v1715_v39 = vpop.eup %1714  ;;  %v967_v46 = vadd.f32 1.0, %v1713_v36 }
 0x221   : > { %v966_v51 = vadd.f32 1.0, %v1715_v39 }
 0x223   : > { %v1717_v7 = vpop.eup %1716 }
 0x224   : > { %v1719_v52 = vpop.eup %1718  ;;  %v969_v55 = vadd.f32 1.0, %v1717_v7 }
 0x225   : > { %v1721_v4 = vpop.eup %1720  ;;  %v968_v21 = vadd.f32 1.0, %v1719_v52 }
 0x226   : > { %v1723_v20 = vpop.eup %1722 }
 0x227   : > { %v1725_v22 = vpop.eup %1724 }
 0x245   : > { %v832_v31 = vpop.xlane.xlu1 %831 }
 0x246   : > { %v1499_v35 = vmul.f32 -1.442695, %v832_v31 }
 0x248   : > { %1734 = vpow2.f32 %v1499_v35 }
 0x249   : > { %1736 = vrcp.f32 %v796_v30  ;;  %v838_v42 = vpop.xlane.xlu1 %837  ;;  %v1727_v30 = vpop.eup %1726 }
 0x24a   : > { %v835_v43 = vpop.xlane.xlu0 %834  ;;  %1738 = vrcp.f32 %v797_v53  ;;  %v1501_v47 = vmul.f32 -1.442695, %v838_v42  ;;  %v1729_v35 = vpop.eup %1728  ;;  %v970_v42 = vadd.f32 1.0, %v1725_v22  ;;  %v2330_v22 = vstv %s2307_s26 }
 0x24b   : > { %v1500_v50 = vmul.f32 -1.442695, %v835_v43  ;;  %1740 = vrcp.f32 %v965_v38  ;;  %v1731_v39 = vpop.eup %1730 }
 0x24c   : > { %1742 = vpow2.f32 %v1501_v47  ;;  %v1733_v43 = vpop.eup %1732 }
 0x24d   : > { %1744 = vpow2.f32 %v1500_v50  ;;  %v2318_v50 = vstv %s2299_s20 }
 0x24e   : > { %v844_v56 = vpop.xlane.xlu1 %843  ;;  %v841_v2 = vpop.xlane.xlu0 %840  ;;  %1746 = vrcp.f32 %v967_v46  ;;  %v2354_v14 = vmul.f32 %v1727_v30, %v2318_v50  ;;  %v2360_v37 = vmul.f32 %v1729_v35, %v2318_v50  ;;  %v2372_v9 = vmul.f32 %v1731_v39, %v2318_v50 }
 0x24f   : > { %v1503_v25 = vmul.f32 -1.442695, %v844_v56  ;;  %v1502_v16 = vmul.f32 -1.442695, %v841_v2  ;;  %1748 = vrcp.f32 %v966_v51  ;;  %v2321_v56 = vstv %s2301_s22 }
 0x250   : > { %2754 = vst [vmem:[#allocation31_spill] sm:$0xff] %v2321_v56  ;;  %v2324_v2 = vstv %s2303_s27  ;;  %v2357_v44 = vmul.f32 %v1727_v30, %v2321_v56  ;;  %v2363_v6 = vmul.f32 %v1729_v35, %v2321_v56  ;;  %v2378_v29 = vmul.f32 %v1733_v43, %v2318_v50 }
 0x251   : > { %1750 = vpow2.f32 %v1503_v25  ;;  %2755 = vst [vmem:[#allocation32_spill] sm:$0xff] %v2324_v2  ;;  %v798_v25 = vadd.f32 1.0, %v1723_v20  ;;  %v2345_v20 = vmul.f32 %v1721_v4, %v2318_v50  ;;  %v2351_v18 = vmul.f32 %v1721_v4, %v2324_v2 }
 0x252   : > { %1752 = vrcp.f32 %v969_v55  ;;  %v850_v31 = vpop.xlane.xlu1 %849  ;;  %v847_v53 = vpop.xlane.xlu0 %846  ;;  %v2369_v40 = vmul.f32 %v1729_v35, %v2324_v2  ;;  %v2381_v5 = vmul.f32 %v1733_v43, %v2321_v56  ;;  %v2387_v3 = vmul.f32 %v1733_v43, %v2324_v2 }
 0x253   : > { %1754 = vpow2.f32 %v1502_v16  ;;  %v1505_v36 = vmul.f32 -1.442695, %v850_v31  ;;  %v1504_v38 = vmul.f32 -1.442695, %v847_v53  ;;  %v2333_v31 = vstv %s2309_s24 }
 0x254   : > { %1756 = vrcp.f32 %v968_v21  ;;  %v2327_v21 = vstv %s2305_s23 }
 0x255   : > { %1758 = vpow2.f32 %v1505_v36  ;;  %v1735_v7 = vpop.eup %1734 }
 0x256   : > { %1760 = vpow2.f32 %v1504_v38  ;;  %v937_v46 = vpop.xlane.xlu1 %936  ;;  %v1737_v47 = vpop.eup %1736  ;;  %v878_v51 = vadd.f32 1.0, %v1735_v7  ;;  %v2336_v38 = vstv %s2311_s17  ;;  %v2339_v7 = vstv %s2313_s30 }
 0x257   : > { %v1514_v52 = vmul.f32 -1.442695, %v937_v46  ;;  %v1739_v55 = vpop.eup %1738  ;;  %1762 = vrcp.f32 %v970_v42  ;;  %v853_v53 = vpop.xlane.xlu0 %852  ;;  %v2342_v46 = vstv %s2315_s12  ;;  %v2348_v42 = vmul.f32 %v1721_v4, %v2321_v56 }
 0x258   : > { %v1741_v16 = vpop.eup %1740  ;;  %1764 = vrcp.f32 %v878_v51  ;;  %v2366_v4 = vmul.f32 %v1727_v30, %v2324_v2  ;;  %v2384_v30 = vmul.f32 %v1731_v39, %v2324_v2  ;;  %v2390_v23 = vmul.f32 %v1737_v47, %v2318_v50 }
 0x259   : > { %v1743_v36 = vpop.eup %1742  ;;  %1766 = vpow2.f32 %v1514_v52  ;;  %v2396_v1 = vmul.f32 %v1737_v47, %v2324_v2  ;;  %v2399_v15 = vmul.f32 %v1739_v55, %v2318_v50  ;;  %v2405_v0 = vmul.f32 %v1739_v55, %v2324_v2 }
 0x25a   : > { %v1745_v19 = vpop.eup %1744  ;;  %v880_v51 = vadd.f32 1.0, %v1743_v36  ;;  %1768 = vrcp.f32 %v798_v25  ;;  %v1019_v45 = vmul.f32 %v1741_v16, %v2327_v21  ;;  %v1073_v13 = vmul.f32 %v1741_v16, %v2330_v22 }
 0x25b   : > { %v1747_v54 = vpop.eup %1746  ;;  %v879_v52 = vadd.f32 1.0, %v1745_v19  ;;  %v2375_v19 = vmul.f32 %v1731_v39, %v2321_v56  ;;  %v940_v35 = vpop.xlane.xlu0 %939  ;;  %v2402_v39 = vmul.f32 %v1739_v55, %v2321_v56  ;;  %v1127_v41 = vmul.f32 %v1741_v16, %v2333_v31 }
 0x25c   : > { %v1749_v11 = vpop.eup %1748  ;;  %1770 = vrcp.f32 %v880_v51  ;;  %v1515_v63 = vmul.f32 -1.442695, %v940_v35  ;;  %v1021_v49 = vmul.f32 %v1747_v54, %v2327_v21  ;;  %v1075_v62 = vmul.f32 %v1747_v54, %v2330_v22 }
 0x25d   : > { %1772 = vrcp.f32 %v879_v52  ;;  %v2393_v52 = vmul.f32 %v1737_v47, %v2321_v56  ;;  %v1074_v55 = vmul.f32 %v1749_v11, %v2330_v22  ;;  %v2416_v34 = vmul.f32 %v1749_v11, %v2333_v31 }
 0x25e   : > { %v1751_v36 = vpop.eup %1750 }
 0x25f   : > { %v1753_v25 = vpop.eup %1752  ;;  %v882_v51 = vadd.f32 1.0, %v1751_v36  ;;  %v1506_v36 = vmul.f32 -1.442695, %v853_v53  ;;  %v1020_v53 = vmul.f32 %v1749_v11, %v2327_v21 }
 0x260   : > { %v1755_v32 = vpop.eup %1754  ;;  %v2419_v35 = vmul.f32 %v1753_v25, %v2327_v21  ;;  %v2422_v61 = vmul.f32 %v1753_v25, %v2330_v22 }
 0x261   : > { %v1757_v12 = vpop.eup %1756  ;;  %1774 = vrcp.f32 %v882_v51  ;;  %v881_v33 = vadd.f32 1.0, %v1755_v32  ;;  %v1129_v51 = vmul.f32 %v1747_v54, %v2333_v31  ;;  %v2425_v32 = vmul.f32 %v1753_v25, %v2333_v31 }
 0x262   : > { %v1759_v43 = vpop.eup %1758  ;;  %1776 = vpow2.f32 %v1506_v36  ;;  %v2428_v54 = vmul.f32 %v1757_v12, %v2327_v21  ;;  %v2434_v36 = vmul.f32 %v1757_v12, %v2330_v22 }
 0x263   : > { %v1761_v47 = vpop.eup %1760  ;;  %v884_v28 = vadd.f32 1.0, %v1759_v43  ;;  %1778 = vpow2.f32 %v1515_v63 }
 0x264   : > { %v1763_v60 = vpop.eup %1762  ;;  %v883_v16 = vadd.f32 1.0, %v1761_v47  ;;  %1780 = vrcp.f32 %v881_v33  ;;  %v2437_v47 = vmul.f32 %v1757_v12, %v2333_v31 }
 0x265   : > { %v1765_v48 = vpop.eup %1764  ;;  %1782 = vrcp.f32 %v884_v28  ;;  %v2445_v33 = vmul.f32 %v1763_v60, %v2327_v21  ;;  %v2451_v12 = vmul.f32 %v1763_v60, %v2333_v31 }
 0x266   : > { %v1767_v43 = vpop.eup %1766  ;;  %v1001_v11 = vmul.f32 %v1765_v48, %v2336_v38  ;;  %v1055_v24 = vmul.f32 %v1765_v48, %v2339_v7  ;;  %v1109_v27 = vmul.f32 %v1765_v48, %v2342_v46  ;;  %1784 = vrcp.f32 %v883_v16 }
 0x267   : > { %v971_v25 = vadd.f32 1.0, %v1767_v43  ;;  %v2439_v59 = vpop.eup %1768  ;;  %v2448_v48 = vmul.f32 %v1763_v60, %v2330_v22 }
 0x268   : > { %v1009_v63 = vadd.f32 %v1001_v11, %v2345_v20  ;;  %v1063_v26 = vadd.f32 %v1055_v24, %v2348_v42  ;;  %v1117_v10 = vadd.f32 %v1109_v27, %v2351_v18 }
 0x269   : > { %v1771_v58 = vpop.eup %1770  ;;  %1786 = vrcp.f32 %v971_v25 }
 0x26a   : > { %v1773_v28 = vpop.eup %1772  ;;  %v1027_v43 = vadd.f32 %v1019_v45, %v1009_v63  ;;  %v1081_v17 = vadd.f32 %v1073_v13, %v1063_v26  ;;  %v1135_v20 = vadd.f32 %v1127_v41, %v1117_v10  ;;  %v1003_v24 = vmul.f32 %v1771_v58, %v2336_v38 }
 0x26b   : > { %v1057_v18 = vmul.f32 %v1771_v58, %v2339_v7  ;;  %v1111_v27 = vmul.f32 %v1771_v58, %v2342_v46  ;;  %v1002_v42 = vmul.f32 %v1773_v28, %v2336_v38  ;;  %v1056_v16 = vmul.f32 %v1773_v28, %v2339_v7 }
 0x26c   : > { %v1035_v11 = vmul.f32 0.33333334, %v1027_v43  ;;  %v1089_v8 = vmul.f32 0.33333334, %v1081_v17  ;;  %v1143_v57 = vmul.f32 0.33333334, %v1135_v20  ;;  %v1011_v60 = vadd.f32 %v1003_v24, %v2354_v14 }
 0x26d   : > { %v1065_v45 = vadd.f32 %v1057_v18, %v2357_v44  ;;  %v1119_v26 = vadd.f32 %v1111_v27, %v2366_v4  ;;  %v1010_v41 = vadd.f32 %v1002_v42, %v2360_v37  ;;  %v1064_v10 = vadd.f32 %v1056_v16, %v2363_v6 }
 0x26e   : > { %v1775_v25 = vpop.eup %1774  ;;  %v1151_v13 = vmax.f32 %v1035_v11, %v1089_v8  ;;  %v1029_v58 = vadd.f32 %v1021_v49, %v1011_v60  ;;  %v1110_v63 = vmul.f32 %v1773_v28, %v2342_v46 }
 0x26f   : > { %v1005_v2 = vmul.f32 %v1775_v25, %v2336_v38  ;;  %v1083_v43 = vadd.f32 %v1075_v62, %v1065_v45  ;;  %v1137_v17 = vadd.f32 %v1129_v51, %v1119_v26  ;;  %v1028_v20 = vadd.f32 %v1020_v53, %v1010_v41  ;;  %v2467_v18 = vpop.eup %1776 }
 0x270   : > { %v1082_v56 = vadd.f32 %v1074_v55, %v1064_v10  ;;  %v1159_v14 = vmax.f32 %v1151_v13, %v1143_v57  ;;  %v1037_v24 = vmul.f32 0.33333334, %v1029_v58  ;;  %v1118_v44 = vadd.f32 %v1110_v63, %v2369_v40  ;;  %v2470_v28 = vpop.eup %1778 }
 0x271   : > { %v1013_v4 = vadd.f32 %v1005_v2, %v2378_v29  ;;  %v1091_v37 = vmul.f32 0.33333334, %v1083_v43  ;;  %v1145_v6 = vmul.f32 0.33333334, %v1137_v17  ;;  %v1036_v27 = vmul.f32 0.33333334, %v1028_v20  ;;  %v1781_v55 = vpop.eup %1780 }
 0x272   : > { %v1059_v49 = vmul.f32 %v1775_v25, %v2339_v7  ;;  %v1167_v42 = vsub.f32 %v1035_v11, %v1159_v14  ;;  %v1191_v62 = vsub.f32 %v1089_v8, %v1159_v14  ;;  %v1215_v51 = vsub.f32 %v1143_v57, %v1159_v14  ;;  %v1783_v2 = vpop.eup %1782 }
 0x273   : > { %v1090_v53 = vmul.f32 0.33333334, %v1082_v56  ;;  %v1153_v16 = vmax.f32 %v1037_v24, %v1091_v37  ;;  %v1136_v60 = vadd.f32 %v2416_v34, %v1118_v44  ;;  %v1031_v40 = vadd.f32 %v2419_v35, %v1013_v4  ;;  %v1785_v13 = vpop.eup %1784 }
 0x274   : > { %v1067_v29 = vadd.f32 %v1059_v49, %v2381_v5  ;;  %v1175_v45 = vmul.f32 1.442695, %v1167_v42  ;;  %v1199_v26 = vmul.f32 1.442695, %v1191_v62  ;;  %v1223_v41 = vmul.f32 1.442695, %v1215_v51 }
 0x275   : > { %v1152_v10 = vmax.f32 %v1036_v27, %v1090_v53  ;;  %v1161_v58 = vmax.f32 %v1153_v16, %v1145_v6  ;;  %v1144_v63 = vmul.f32 0.33333334, %v1136_v60  ;;  %v1039_v11 = vmul.f32 0.33333334, %v1031_v40 }
 0x276   : > { %v1085_v57 = vadd.f32 %v2422_v61, %v1067_v29  ;;  %v2476_v8 = vpop.eup %1786  ;;  %1788 = vpow2.f32 %v1175_v45  ;;  %v1113_v34 = vmul.f32 %v1775_v25, %v2342_v46  ;;  %v1004_v56 = vmul.f32 %v1781_v55, %v2336_v38 }
 0x277   : > { %v1058_v5 = vmul.f32 %v1781_v55, %v2339_v7  ;;  %1790 = vpow2.f32 %v1199_v26  ;;  %v1169_v35 = vsub.f32 %v1037_v24, %v1161_v58  ;;  %v1193_v43 = vsub.f32 %v1091_v37, %v1161_v58 }
 0x278   : > { %v1217_v17 = vsub.f32 %v1145_v6, %v1161_v58  ;;  %1792 = vpow2.f32 %v1223_v41  ;;  %v1160_v20 = vmax.f32 %v1152_v10, %v1144_v63  ;;  %v1093_v14 = vmul.f32 0.33333334, %v1085_v57 }
 0x279   : > { %v1121_v44 = vadd.f32 %v1113_v34, %v2387_v3  ;;  %v1179_v4 = vmul.f32 1.442695, %v1169_v35  ;;  %v1203_v61 = vmul.f32 1.442695, %v1193_v43  ;;  %v1012_v42 = vadd.f32 %v1004_v56, %v2372_v9 }
 0x27a   : > { %v1227_v49 = vmul.f32 1.442695, %v1217_v17  ;;  %v1168_v62 = vsub.f32 %v1036_v27, %v1160_v20  ;;  %v1192_v25 = vsub.f32 %v1090_v53, %v1160_v20  ;;  %v1216_v51 = vsub.f32 %v1144_v63, %v1160_v20 }
 0x27b   : > { %v1139_v16 = vadd.f32 %v2425_v32, %v1121_v44  ;;  %1794 = vpow2.f32 %v1179_v4  ;;  %v1155_v60 = vmax.f32 %v1039_v11, %v1093_v14  ;;  %v1030_v24 = vadd.f32 %v2428_v54, %v1012_v42 }
 0x27c   : > { %v1066_v37 = vadd.f32 %v1058_v5, %v2375_v19  ;;  %1796 = vpow2.f32 %v1203_v61  ;;  %v1177_v6 = vmul.f32 1.442695, %v1168_v62  ;;  %v1201_v40 = vmul.f32 1.442695, %v1192_v25 }
 0x27d   : > { %v1225_v3 = vmul.f32 1.442695, %v1216_v51  ;;  %1798 = vpow2.f32 %v1227_v49  ;;  %v1147_v29 = vmul.f32 0.33333334, %v1139_v16  ;;  %v1038_v45 = vmul.f32 0.33333334, %v1030_v24 }
 0x27e   : > { %v1084_v9 = vadd.f32 %v2434_v36, %v1066_v37  ;;  %1800 = vpow2.f32 %v1177_v6  ;;  %v1112_v27 = vmul.f32 %v1781_v55, %v2342_v46  ;;  %v1007_v32 = vmul.f32 %v1783_v2, %v2336_v38 }
 0x27f   : > { %v1061_v53 = vmul.f32 %v1783_v2, %v2339_v7  ;;  %1802 = vpow2.f32 %v1201_v40  ;;  %v1163_v54 = vmax.f32 %v1155_v60, %v1147_v29  ;;  %v885_v19 = vadd.f32 1.0, %v2467_v18 }
 0x280   : > { %v1092_v26 = vmul.f32 0.33333334, %v1084_v9  ;;  %1804 = vpow2.f32 %v1225_v3  ;;  %v1120_v41 = vadd.f32 %v1112_v27, %v2384_v30  ;;  %v1015_v10 = vadd.f32 %v1007_v32, %v2399_v15 }
 0x281   : > { %v1115_v58 = vmul.f32 %v1783_v2, %v2342_v46  ;;  %v1171_v36 = vsub.f32 %v1039_v11, %v1163_v54  ;;  %v1195_v63 = vsub.f32 %v1093_v14, %v1163_v54  ;;  %v1219_v57 = vsub.f32 %v1147_v29, %v1163_v54 }
 0x282   : > { %v1069_v55 = vadd.f32 %v1061_v53, %v2402_v39  ;;  %v1138_v34 = vadd.f32 %v2437_v47, %v1120_v41  ;;  %v1154_v56 = vmax.f32 %v1038_v45, %v1092_v26  ;;  %v1006_v5 = vmul.f32 %v1785_v13, %v2336_v38 }
 0x283   : > { %v1060_v35 = vmul.f32 %v1785_v13, %v2339_v7  ;;  %v2498_v18 = vpop.eup %1788  ;;  %v1183_v43 = vmul.f32 1.442695, %v1171_v36  ;;  %v1207_v30 = vmul.f32 1.442695, %v1195_v63  ;;  %v1231_v17 = vmul.f32 1.442695, %v1219_v57 }
 0x284   : > { %v1114_v15 = vmul.f32 %v1785_v13, %v2342_v46  ;;  %v2501_v2 = vpop.eup %1790  ;;  %v1146_v11 = vmul.f32 0.33333334, %v1138_v34  ;;  %v1014_v20 = vadd.f32 %v1006_v5, %v2390_v23  ;;  %v1025_v47 = vmul.f32 %v2476_v8, %v2327_v21 }
 0x285   : > { %v1068_v39 = vadd.f32 %v1060_v35, %v2393_v52  ;;  %v2507_v14 = vpop.eup %1792  ;;  %v1239_v44 = vadd.f32 %v2501_v2, %v2498_v18  ;;  %1806 = vpow2.f32 %v1183_v43  ;;  %v1079_v13 = vmul.f32 %v2476_v8, %v2330_v22 }
 0x286   : > { %v1122_v4 = vadd.f32 %v1114_v15, %v2396_v1  ;;  %1808 = vpow2.f32 %v1207_v30  ;;  %v1162_v61 = vmax.f32 %v1154_v56, %v1146_v11  ;;  %v1032_v23 = vadd.f32 %v2445_v33, %v1014_v20 }
 0x287   : > { %v1086_v52 = vadd.f32 %v2448_v48, %v1068_v39  ;;  %v1247_v49 = vadd.f32 %v2507_v14, %v1239_v44  ;;  %1810 = vpow2.f32 %v1231_v17  ;;  %v1033_v62 = vadd.f32 %v1025_v47, %v1015_v10 }
 0x288   : > { %v1140_v42 = vadd.f32 %v2451_v12, %v1122_v4  ;;  %v2518_v25 = vpop.eup %1794  ;;  %v1170_v51 = vsub.f32 %v1038_v45, %v1162_v61  ;;  %v1194_v16 = vsub.f32 %v1092_v26, %v1162_v61  ;;  %v1218_v1 = vsub.f32 %v1146_v11, %v1162_v61 }
 0x289   : > { %v1040_v60 = vmul.f32 0.33333334, %v1032_v23  ;;  %v2520_v24 = vpop.eup %1796  ;;  %1812 = vrcp.f32 %v1247_v49  ;;  %v1123_v37 = vadd.f32 %v1115_v58, %v2405_v0  ;;  %v1094_v33 = vmul.f32 0.33333334, %v1086_v52 }
 0x28a   : > { %v1148_v6 = vmul.f32 0.33333334, %v1140_v42  ;;  %v2523_v48 = vpop.eup %1798  ;;  %v1241_v40 = vadd.f32 %v2520_v24, %v2518_v25  ;;  %v1181_v12 = vmul.f32 1.442695, %v1170_v51  ;;  %v1205_v3 = vmul.f32 1.442695, %v1194_v16 }
 0x28b   : > { %v1229_v29 = vmul.f32 1.442695, %v1218_v1  ;;  %v2527_v9 = vpop.eup %1800  ;;  %v1156_v45 = vmax.f32 %v1040_v60, %v1094_v33  ;;  %v1087_v27 = vadd.f32 %v1079_v13, %v1069_v55  ;;  %v1133_v32 = vmul.f32 %v2476_v8, %v2333_v31  ;;  %v2756_v42 = vld [vmem:[#allocation31_spill] sm:$0xff] }
 0x28c   : > { %1814 = vrcp.f32 %v885_v19  ;;  %v2531_v53 = vpop.eup %1802  ;;  %v1249_v0 = vadd.f32 %v2523_v48, %v1241_v40  ;;  %v1041_v54 = vmul.f32 0.33333334, %v1033_v62  ;;  %v972_v26 = vadd.f32 1.0, %v2470_v28 }
 0x28d   : > { %1816 = vpow2.f32 %v1181_v12  ;;  %v2535_v41 = vpop.eup %1804  ;;  %v1240_v10 = vadd.f32 %v2531_v53, %v2527_v9  ;;  %v1164_v58 = vmax.f32 %v1156_v45, %v1148_v6  ;;  %v1095_v36 = vmul.f32 0.33333334, %v1087_v27  ;;  %v2758_v45 = vld [vmem:[#allocation7_spill] sm:$0xff] }
 0x28e   : > { %1818 = vpow2.f32 %v1205_v3  ;;  %v1141_v63 = vadd.f32 %v1133_v32, %v1123_v37  ;;  %v998_v49 = vmul.f32 %v2439_v59, %v2318_v50  ;;  %v1052_v62 = vmul.f32 %v2439_v59, %v2756_v42  ;;  %v2757_v3 = vld [vmem:[#allocation32_spill] sm:$0xff] }
 0x28f   : > { %1820 = vrcp.f32 %v1249_v0  ;;  %v1248_v8 = vadd.f32 %v2535_v41, %v1240_v10  ;;  %v1172_v19 = vsub.f32 %v1040_v60, %v1164_v58  ;;  %v1196_v57 = vsub.f32 %v1094_v33, %v1164_v58 }
 0x290   : > { %1822 = vpow2.f32 %v1229_v29  ;;  %v1220_v55 = vsub.f32 %v1148_v6, %v1164_v58  ;;  %v1149_v34 = vmul.f32 0.33333334, %v1141_v63  ;;  %v1157_v56 = vmax.f32 %v1041_v54, %v1095_v36 }
 0x291   : > { %1824 = vrcp.f32 %v972_v26  ;;  %v1185_v28 = vmul.f32 1.442695, %v1172_v19  ;;  %v1209_v5 = vmul.f32 1.442695, %v1196_v57  ;;  %v1106_v29 = vmul.f32 %v2439_v59, %v2757_v3 }
 0x292   : > { %1826 = vrcp.f32 %v1248_v8  ;;  %v2540_v35 = vpop.eup %1806  ;;  %v1233_v43 = vmul.f32 1.442695, %v1220_v55  ;;  %v1165_v30 = vmax.f32 %v1157_v56, %v1149_v34 }
 0x293   : > { %v2542_v17 = vpop.eup %1808  ;;  %1828 = vpow2.f32 %v1185_v28 }
 0x294   : > { %v2544_v15 = vpop.eup %1810  ;;  %v1243_v11 = vadd.f32 %v2542_v17, %v2540_v35  ;;  %1830 = vpow2.f32 %v1209_v5  ;;  %v1173_v20 = vsub.f32 %v1041_v54, %v1165_v30  ;;  %v1197_v39 = vsub.f32 %v1095_v36, %v1165_v30  ;;  %v2761_v54 = vld [vmem:[#allocation15_spill] sm:$0xff] }
 0x295   : > { %v1221_v47 = vsub.f32 %v1149_v34, %v1165_v30  ;;  %1832 = vpow2.f32 %v1233_v43  ;;  %v2763_v30 = vld [vmem:[#allocation8_spill] sm:$0xff] }
 0x296   : > { %v1813_v44 = vpop.eup %1812  ;;  %v1251_v4 = vadd.f32 %v2544_v15, %v1243_v11  ;;  %v1187_v13 = vmul.f32 1.442695, %v1173_v20  ;;  %v1211_v61 = vmul.f32 1.442695, %v1197_v39  ;;  %v2764_v11 = vmax.f32 %v2763_v30, 0.0  ;;  %v2765_v39 = vld [vmem:[#allocation22_spill] sm:$0xff] }
 0x297   : > { %v1263_v23 = vmul.f32 3.0, %v1813_v44  ;;  %v1235_v51 = vmul.f32 1.442695, %v1221_v47  ;;  %v2766_v44 = vld [vmem:[#allocation17_spill] sm:$0xff] }
 0x298   : > { %1834 = vrcp.f32 %v1251_v4 }
 0x299   : > { %v1815_v52 = vpop.eup %1814  ;;  %v1271_v1 = vmul.f32 %v2498_v18, %v1263_v23  ;;  %v1287_v60 = vmul.f32 %v2501_v2, %v1263_v23  ;;  %v1303_v37 = vmul.f32 %v2507_v14, %v1263_v23  ;;  %1836 = vpow2.f32 %v1187_v13  ;;  %v2760_v2 = vld [vmem:[#allocation21_spill] sm:$0xff] }
 0x29a   : > { %v2553_v16 = vpop.eup %1816  ;;  %1838 = vpow2.f32 %v1211_v61  ;;  %v1008_v6 = vmul.f32 %v1815_v52, %v2336_v38  ;;  %v1062_v50 = vmul.f32 %v1815_v52, %v2339_v7  ;;  %v1116_v40 = vmul.f32 %v1815_v52, %v2342_v46 }
 0x29b   : > { %v2558_v33 = vpop.eup %1818  ;;  %v2759_v18 = vmax.f32 %v2758_v45, 0.0  ;;  %v1295_v32 = vmul.f32 %v1287_v60, %v2760_v2  ;;  %v2762_v38 = vmax.f32 %v2761_v54, 0.0  ;;  %1840 = vpow2.f32 %v1235_v51  ;;  %v2768_v51 = vld [vmem:[#allocation9_spill] sm:$0xff] }
 0x29c   : > { %v1821_v12 = vpop.eup %1820  ;;  %v1242_v14 = vadd.f32 %v2558_v33, %v2553_v16  ;;  %v1016_v46 = vadd.f32 %v1008_v6, %v998_v49  ;;  %v1070_v36 = vadd.f32 %v1062_v50, %v1052_v62  ;;  %v1124_v63 = vadd.f32 %v1116_v40, %v1106_v29 }
 0x29d   : > { %v1279_v27 = vmul.f32 %v1271_v1, %v2759_v18  ;;  %v2570_v0 = vpop.eup %1822  ;;  %v1311_v26 = vmul.f32 %v1303_v37, %v2762_v38  ;;  %v1265_v7 = vmul.f32 3.0, %v1821_v12  ;;  %v2769_v1 = vmax.f32 %v2768_v51, 0.0  ;;  %v2770_v37 = vld [vmem:[#allocation23_spill] sm:$0xff]  ;;  %v2771_v12 = vld [vmem:[#allocation16_spill] sm:$0xff] }
 0x29e   : > { %v1825_v10 = vpop.eup %1824  ;;  %v1250_v59 = vadd.f32 %v2570_v0, %v1242_v14  ;;  %v2772_v3 = vmax.f32 %v2771_v12, 0.0 }
 0x29f   : > { %v1319_v58 = vadd.f32 %v1295_v32, %v1279_v27  ;;  %v1827_v8 = vpop.eup %1826  ;;  %v1273_v19 = vmul.f32 %v2518_v25, %v1265_v7  ;;  %v1289_v57 = vmul.f32 %v2520_v24, %v1265_v7  ;;  %v1305_v55 = vmul.f32 %v2523_v48, %v1265_v7 }
 0x2a0   : > { %v1026_v34 = vmul.f32 %v1825_v10, %v2327_v21  ;;  %v1264_v28 = vmul.f32 3.0, %v1827_v8  ;;  %1842 = vrcp.f32 %v1250_v59  ;;  %v1080_v5 = vmul.f32 %v1825_v10, %v2330_v22  ;;  %v2580_v43 = vpop.eup %1828 }
 0x2a1   : > { %v1327_v56 = vadd.f32 %v1319_v58, %v1311_v26  ;;  %v1281_v20 = vmul.f32 %v1273_v19, %v2764_v11  ;;  %v1297_v47 = vmul.f32 %v1289_v57, %v2765_v39  ;;  %v2767_v25 = vmax.f32 %v2766_v44, 0.0  ;;  %v2587_v13 = vpop.eup %1830  ;;  %v2773_v58 = vld [vmem:[#allocation11_spill] sm:$0xff] }
 0x2a2   : > { %v1034_v24 = vadd.f32 %v1026_v34, %v1016_v46  ;;  %v1272_v21 = vmul.f32 %v2527_v9, %v1264_v28  ;;  %v1288_v48 = vmul.f32 %v2531_v53, %v1264_v28  ;;  %v1304_v22 = vmul.f32 %v2535_v41, %v1264_v28  ;;  %v1833_v62 = vpop.eup %1832 }
 0x2a3   : > { %v1313_v4 = vmul.f32 %v1305_v55, %v2767_v25  ;;  %1335 = vst.msk [vmem:[%s2092_s0] sm:$0xff] %vm742_vm2, %v1327_v56  ;;  %v1088_v61 = vadd.f32 %v1080_v5, %v1070_v36  ;;  %v1321_v23 = vadd.f32 %v1297_v47, %v1281_v20  ;;  %v1244_v52 = vadd.f32 %v2587_v13, %v2580_v43  ;;  %v2776_v56 = vld [vmem:[#allocation19_spill] sm:$0xff] }
 0x2a4   : > { %v1042_v49 = vmul.f32 0.33333334, %v1034_v24  ;;  %v1134_v42 = vmul.f32 %v1825_v10, %v2333_v31  ;;  %v1280_v60 = vmul.f32 %v1272_v21, %v2769_v1  ;;  %v1296_v6 = vmul.f32 %v1288_v48, %v2770_v37  ;;  %v2780_v48 = vld [vmem:[#allocation24_spill] sm:$0xff] }
 0x2a5   : > { %v1096_v9 = vmul.f32 0.33333334, %v1088_v61  ;;  %v1329_v50 = vadd.f32 %v1321_v23, %v1313_v4  ;;  %v1252_v53 = vadd.f32 %v1833_v62, %v1244_v52  ;;  %v1835_v41 = vpop.eup %1834  ;;  %v1312_v29 = vmul.f32 %v1304_v22, %v2772_v3  ;;  %v2778_v4 = vld [vmem:[#allocation10_spill] sm:$0xff] }
 0x2a6   : > { %v1142_v40 = vadd.f32 %v1134_v42, %v1124_v63  ;;  %v1320_v45 = vadd.f32 %v1296_v6, %v1280_v60  ;;  %v1837_v27 = vpop.eup %1836  ;;  %v1267_v31 = vmul.f32 3.0, %v1835_v41  ;;  %v2774_v59 = vmax.f32 %v2773_v58, 0.0  ;;  %v2775_v63 = vld [vmem:[#allocation26_spill] sm:$0xff]  ;;  %v2783_v60 = vld [vmem:[#allocation12_spill] sm:$0xff]  ;;  %v2791_v58 = vld [vmem:[#allocation25_spill] sm:$0xff] }
 0x2a7   : > { %v1158_v18 = vmax.f32 %v1042_v49, %v1096_v9  ;;  %1337 = vst.msk [vmem:[%s2092_s0 + $0x10] sm:$0xff] %vm742_vm2, %v1329_v50  ;;  %1844 = vrcp.f32 %v1252_v53  ;;  %v1839_v2 = vpop.eup %1838  ;;  %v2779_v24 = vmax.f32 %v2778_v4, 0.0  ;;  %v2781_v23 = vld [vmem:[#allocation18_spill] sm:$0xff]  ;;  %v2784_v37 = vmax.f32 %v2783_v60, 0.0 }
 0x2a8   : > { %v1328_v32 = vadd.f32 %v1320_v45, %v1312_v29  ;;  %v1150_v14 = vmul.f32 0.33333334, %v1142_v40  ;;  %v1275_v54 = vmul.f32 %v2540_v35, %v1267_v31  ;;  %v1291_v38 = vmul.f32 %v2542_v17, %v1267_v31  ;;  %v1841_v46 = vpop.eup %1840  ;;  %v2786_v40 = vld [vmem:[#allocation20_spill] sm:$0xff] }
 0x2a9   : > { %v1307_v26 = vmul.f32 %v2544_v15, %v1267_v31  ;;  %v1245_v7 = vadd.f32 %v1839_v2, %v1837_v27  ;;  %v2777_v17 = vmax.f32 %v2776_v56, 0.0  ;;  %v2782_v52 = vmax.f32 %v2781_v23, 0.0 }
 0x2aa   : > { %1336 = vst.msk [vmem:[%s2092_s0 + $0x8] sm:$0xff] %vm742_vm2, %v1328_v32  ;;  %v1166_v10 = vmax.f32 %v1158_v18, %v1150_v14  ;;  %v1283_v36 = vmul.f32 %v1275_v54, %v2774_v59  ;;  %v1299_v8 = vmul.f32 %v1291_v38, %v2775_v63  ;;  %v2787_v41 = vmax.f32 %v2786_v40, 0.0  ;;  %v2788_v32 = vld [vmem:[#allocation13_spill] sm:$0xff] }
 0x2ab   : > { %v1253_v19 = vadd.f32 %v1841_v46, %v1245_v7  ;;  %v1315_v28 = vmul.f32 %v1307_v26, %v2777_v17  ;;  %v2790_v38 = vld [vmem:[#allocation29_spill] sm:$0xff]  ;;  %v2792_v59 = vmax.f32 %v2791_v58, 0.0  ;;  %v2795_v17 = vld [vmem:[#allocation30_spill] sm:$0xff] }
 0x2ac   : > { %v1174_v57 = vsub.f32 %v1042_v49, %v1166_v10  ;;  %v1198_v55 = vsub.f32 %v1096_v9, %v1166_v10  ;;  %v1222_v34 = vsub.f32 %v1150_v14, %v1166_v10  ;;  %v1323_v15 = vadd.f32 %v1299_v8, %v1283_v36  ;;  %v2785_v9 = vld [vmem:[#allocation27_spill] sm:$0xff] }
 0x2ad   : > { %v1843_v35 = vpop.eup %1842  ;;  %1846 = vrcp.f32 %v1253_v19  ;;  %v2789_v14 = vmax.f32 %v2788_v32, 0.0 }
 0x2ae   : > { %v1266_v5 = vmul.f32 3.0, %v1843_v35  ;;  %v1189_v30 = vmul.f32 1.442695, %v1174_v57  ;;  %v1213_v11 = vmul.f32 1.442695, %v1198_v55  ;;  %v1331_v20 = vadd.f32 %v1323_v15, %v1315_v28  ;;  %v2796_v15 = vld [vmem:[#allocation28_spill] sm:$0xff] }
 0x2af   : > { %v1237_v39 = vmul.f32 1.442695, %v1222_v34  ;;  %v2793_v34 = vld [vmem:[#allocation14_spill] sm:$0xff] }
 0x2b0   : > { %v1274_v47 = vmul.f32 %v2553_v16, %v1266_v5  ;;  %v1290_v44 = vmul.f32 %v2558_v33, %v1266_v5  ;;  %v1306_v25 = vmul.f32 %v2570_v0, %v1266_v5  ;;  %1848 = vpow2.f32 %v1189_v30  ;;  %1339 = vst.msk [vmem:[%s2092_s0 + $0x20] sm:$0xff] %vm742_vm2, %v1331_v20 }
 0x2b1   : > { %1850 = vpow2.f32 %v1213_v11  ;;  %v2794_v35 = vmax.f32 %v2793_v34, 0.0  ;;  %v2797_v5 = vmax.f32 %v2796_v15, 0.0 }
 0x2b2   : > { %v1282_v21 = vmul.f32 %v1274_v47, %v2779_v24  ;;  %v1298_v22 = vmul.f32 %v1290_v44, %v2780_v48  ;;  %1852 = vpow2.f32 %v1237_v39  ;;  %v1314_v49 = vmul.f32 %v1306_v25, %v2782_v52 }
 0x2b4   : > { %v1845_v61 = vpop.eup %1844  ;;  %v1322_v16 = vadd.f32 %v1298_v22, %v1282_v21 }
 0x2b5   : > { %v1268_v42 = vmul.f32 3.0, %v1845_v61 }
 0x2b6   : > { %v1330_v33 = vadd.f32 %v1322_v16, %v1314_v49 }
 0x2b7   : > { %v1276_v51 = vmul.f32 %v2580_v43, %v1268_v42  ;;  %v1292_v0 = vmul.f32 %v2587_v13, %v1268_v42  ;;  %v1308_v1 = vmul.f32 %v1833_v62, %v1268_v42 }
 0x2b8   : > { %1338 = vst.msk [vmem:[%s2092_s0 + $0x18] sm:$0xff] %vm742_vm2, %v1330_v33 }
 0x2b9   : > { %v1284_v6 = vmul.f32 %v1276_v51, %v2784_v37  ;;  %v1300_v50 = vmul.f32 %v1292_v0, %v2785_v9  ;;  %v1316_v12 = vmul.f32 %v1308_v1, %v2787_v41 }
 0x2ba   : > { %v1847_v53 = vpop.eup %1846 }
 0x2bb   : > { %v1324_v3 = vadd.f32 %v1300_v50, %v1284_v6  ;;  %v1269_v29 = vmul.f32 3.0, %v1847_v53 }
 0x2bd   : > { %v1849_v45 = vpop.eup %1848  ;;  %v1332_v43 = vadd.f32 %v1324_v3, %v1316_v12  ;;  %v1277_v18 = vmul.f32 %v1837_v27, %v1269_v29  ;;  %v1293_v31 = vmul.f32 %v1839_v2, %v1269_v29  ;;  %v1309_v13 = vmul.f32 %v1841_v46, %v1269_v29 }
 0x2be   : > { %v1851_v62 = vpop.eup %1850 }
 0x2bf   : > { %1340 = vst.msk [vmem:[%s2092_s0 + $0x28] sm:$0xff] %vm742_vm2, %v1332_v43  ;;  %v1285_v54 = vmul.f32 %v1277_v18, %v2789_v14  ;;  %v1301_v26 = vmul.f32 %v1293_v31, %v2790_v38  ;;  %v1246_v7 = vadd.f32 %v1851_v62, %v1849_v45  ;;  %v1853_v10 = vpop.eup %1852  ;;  %v1317_v36 = vmul.f32 %v1309_v13, %v2792_v59 }
 0x2c1   : > { %v1325_v63 = vadd.f32 %v1301_v26, %v1285_v54  ;;  %v1254_v8 = vadd.f32 %v1853_v10, %v1246_v7 }
 0x2c3   : > { %v1333_v19 = vadd.f32 %v1325_v63, %v1317_v36  ;;  %1854 = vrcp.f32 %v1254_v8 }
 0x2c5   : > { %1341 = vst.msk [vmem:[%s2092_s0 + $0x30] sm:$0xff] %vm742_vm2, %v1333_v19 }
 0x2d0   : > { %v1855_v27 = vpop.eup %1854 }
 0x2d1   : > { %v1270_v2 = vmul.f32 3.0, %v1855_v27 }
 0x2d3   : > { %v1278_v46 = vmul.f32 %v1849_v45, %v1270_v2  ;;  %v1294_v57 = vmul.f32 %v1851_v62, %v1270_v2  ;;  %v1310_v55 = vmul.f32 %v1853_v10, %v1270_v2 }
 0x2d5   : > { %v1286_v56 = vmul.f32 %v1278_v46, %v2794_v35  ;;  %v1302_v28 = vmul.f32 %v1294_v57, %v2795_v17  ;;  %v1318_v30 = vmul.f32 %v1310_v55, %v2797_v5 }
 0x2d7   : > { %v1326_v11 = vadd.f32 %v1302_v28, %v1286_v56 }
 0x2d9   : > { %v1334_v20 = vadd.f32 %v1326_v11, %v1318_v30 }
 0x2db   : > { %1342 = vst.msk [vmem:[%s2092_s0 + $0x38] sm:$0xff] %vm742_vm2, %v1334_v20 }
 0x2dc PF: > { %s19_s11 = sadd.s32 1, %s1929_s11   ;;  %s2798_s27 = smov %s1909_s28 }
 0x2dd   : > { %p16_p11 = scmp.ge.s32.totalorder %s19_s11, 10   ;;  %s2799_s28 = smov %s2052_s25 }
 0x2de   : > { %s2800_s29 = smov %s1921_s9  ;;  %s2801_s30 = smov %s1925_s10 }
 0x2df   : > { %s2802_s9 = smov %s2805_s13  ;;  %s2803_s10 = smov %s2809_s14 }
 0x2e0   :  { %18 = sbr.rel (!%p16_p11) target bundleno = 7 (0x7), region = 147 }
 0x2e5   :  { %1365 = vsyncpa [#allocation4], 1 }
 0x2e6   :  { %1367 = vsyncpa [#allocation4 + $0x1], 1 }

</bundles_post_ra>
